<compile_context>
chip_gen: v6e
topology: v6e:2x2x1
jax: 0.10.0
libtpu: 0.0.40
codegen_flags: <defaults>
</compile_context>

<pallas_src>
import functools

import jax
import jax.numpy as jnp
from jax import lax
from jax.experimental import pallas as pl
from jax.experimental.pallas import tpu as pltpu


def _lstm_step(pre, hdim, c):
    """One LSTM cell update from the (B, 4*hdim) pre-activation row.

    Merged transcendentals: one sigmoid + one tanh over the full gate row
    (two full-width EUP passes instead of four masked sub-vreg ones), then
    static lane slices pick the gates.  PyTorch gate order [i, f, g, o].
    """
    sg = jax.nn.sigmoid(pre)
    th = jnp.tanh(pre)
    i = sg[:, 0 * hdim:1 * hdim]
    f = sg[:, 1 * hdim:2 * hdim]
    g = th[:, 2 * hdim:3 * hdim]
    o = sg[:, 3 * hdim:4 * hdim]
    c = f * c + i * g
    h = o * jnp.tanh(c)
    return h, c


def _autoencoder_kernel(x_ref,      # (Bt, S)  VMEM  batch tile of sequences (n_features == 1)
                        wih_e_ref,  # (1, 4E)  VMEM  encoder W_ih^T
                        whh_e_ref,  # (E, 4E)  VMEM  encoder W_hh^T
                        b_e_ref,    # (1, 4E)  VMEM  encoder b_ih + b_hh
                        wih_d_ref,  # (E, 4H)  VMEM  decoder W_ih^T
                        whh_d_ref,  # (H, 4H)  VMEM  decoder W_hh^T
                        b_d_ref,    # (1, 4H)  VMEM  decoder b_ih + b_hh
                        wout_ref,   # (1, H)   VMEM  output Linear weight (PyTorch layout)
                        bout_ref,   # (1, 1)   VMEM  output Linear bias
                        out_ref,    # (Bt, S)  VMEM  output
                        *, seq_len):
    E = whh_e_ref.shape[0]
    H = whh_d_ref.shape[0]
    Bt = x_ref.shape[0]

    # ---- Encoder LSTM: scalar input per step, hidden size E, batch Bt ----
    x = x_ref[...]                                   # (Bt, S)
    wih_e = wih_e_ref[...]                           # (1, 4E)
    whh_e = whh_e_ref[...]                           # (E, 4E)
    b_e = b_e_ref[...]                               # (1, 4E)

    # Hoisted input terms: independent of h, computed off the serial h-chain.
    xih = [x[:, t:t + 1] * wih_e + b_e for t in range(seq_len)]   # each (Bt, 4E)

    h = jnp.zeros((Bt, E), jnp.float32)
    c = jnp.zeros((Bt, E), jnp.float32)
    for t in range(seq_len):                         # fully unrolled
        pre = xih[t] + jnp.dot(h, whh_e, preferred_element_type=jnp.float32)
        h, c = _lstm_step(pre, E, c)
    h_enc = h                                        # (Bt, E)

    # ---- Decoder LSTM: encoder hidden state is the input at every step ----
    whh_d = whh_d_ref[...]                           # (H, 4H)
    wout = wout_ref[...]                             # (1, H)
    bout = bout_ref[...]                             # (1, 1)
    ih_const = (jnp.dot(h_enc, wih_d_ref[...],
                        preferred_element_type=jnp.float32) + b_d_ref[...])

    h = jnp.zeros((Bt, H), jnp.float32)
    c = jnp.zeros((Bt, H), jnp.float32)
    for t in range(seq_len):                         # fully unrolled
        pre = ih_const + jnp.dot(h, whh_d, preferred_element_type=jnp.float32)
        h, c = _lstm_step(pre, H, c)
        # Fused Linear(H, 1): VPU multiply + lane reduce, off the h-chain.
        out_ref[:, t:t + 1] = jnp.sum(h * wout, axis=-1, keepdims=True) + bout


def recurrent_autoencoder_forward_batched(xs, params, block_b=None):
    """xs: (B, seq_len, 1) or (B, seq_len).  Returns (B, seq_len, 1).

    One pallas_call for the whole batch: weights are DMA'd once (constant
    index_maps) and stay VMEM-resident; x/out stream per batch tile.
    """
    if xs.ndim == 3:
        assert xs.shape[-1] == 1, "module semantics require n_features == 1"
        x2 = xs[..., 0]
    else:
        x2 = xs
    B, S = x2.shape
    if block_b is None:
        block_b = B
    assert B % block_b == 0, (B, block_b)
    # (8,128)-rule: second-to-last block dim must be divisible by 8 or == B.
    assert block_b == B or block_b % 8 == 0, block_b

    weights = (params["wih_e"], params["whh_e"], params["b_e"],
               params["wih_d"], params["whh_d"], params["b_d"],
               params["wout"], params["bout"])
    const_specs = [pl.BlockSpec(w.shape, lambda b: (0, 0)) for w in weights]

    kernel = functools.partial(_autoencoder_kernel, seq_len=S)
    out2 = pl.pallas_call(
        kernel,
        out_shape=jax.ShapeDtypeStruct((B, S), jnp.float32),
        grid=(B // block_b,),
        in_specs=[pl.BlockSpec((block_b, S), lambda b: (b, 0))] + const_specs,
        out_specs=pl.BlockSpec((block_b, S), lambda b: (b, 0)),
        compiler_params=pltpu.CompilerParams(
            dimension_semantics=("parallel",)),   # 2-TC split on v7x
    )(x2.astype(jnp.float32), *weights)
    return out2[..., None]                        # (B, S, 1)


def recurrent_autoencoder_forward(x, params):
    """Module-faithful single-sequence forward.  x: (seq_len, 1) -> (seq_len, 1)."""
    S, n_features = x.shape
    assert n_features == 1, "module semantics require n_features == 1"
    out = recurrent_autoencoder_forward_batched(x.reshape(1, S, 1), params)
    return out[0]


def init_params(key, embedding_dim):
    """Deterministic PyTorch-style U(-1/sqrt(h), 1/sqrt(h)) init; pre-transposed."""
    E = embedding_dim
    H = 2 * E
    k_e = 1.0 / float(jnp.sqrt(jnp.float32(E)))
    k_d = 1.0 / float(jnp.sqrt(jnp.float32(H)))
    ks = jax.random.split(key, 10)
    u = lambda k, shape, s: jax.random.uniform(k, shape, jnp.float32, -s, s)
    # Encoder nn.LSTM(input_size=1, hidden_size=E)
    w_ih_e = u(ks[0], (4 * E, 1), k_e)
    w_hh_e = u(ks[1], (4 * E, E), k_e)
    b_ih_e = u(ks[2], (4 * E,), k_e)
    b_hh_e = u(ks[3], (4 * E,), k_e)
    # Decoder nn.LSTM(input_size=E, hidden_size=H=2E)
    w_ih_d = u(ks[4], (4 * H, E), k_d)
    w_hh_d = u(ks[5], (4 * H, H), k_d)
    b_ih_d = u(ks[6], (4 * H,), k_d)
    b_hh_d = u(ks[7], (4 * H,), k_d)
    # nn.Linear(H, 1)
    w_out = u(ks[8], (1, H), k_d)
    b_out = u(ks[9], (1,), k_d)
    return {
        "wih_e": w_ih_e.T,                  # (1, 4E)
        "whh_e": w_hh_e.T,                  # (E, 4E)
        "b_e": (b_ih_e + b_hh_e)[None, :],  # (1, 4E)
        "wih_d": w_ih_d.T,                  # (E, 4H)
        "whh_d": w_hh_d.T,                  # (H, 4H)
        "b_d": (b_ih_d + b_hh_d)[None, :],  # (1, 4H)
        "wout": w_out,                      # (1, H)  (PyTorch Linear layout)
        "bout": b_out[None, :],             # (1, 1)
    }


def reference_forward(x, params):
    """Pure-JAX reference of the PyTorch forward (LSTM variant). x: (S, 1)."""
    S = x.shape[0]
    E = params["whh_e"].shape[0]
    H = params["whh_d"].shape[0]
    xv = x.reshape(S).astype(jnp.float32)

    def enc_step(carry, x_t):
        h, c = carry
        pre = x_t * params["wih_e"][0] + h @ params["whh_e"] + params["b_e"][0]
        i = jax.nn.sigmoid(pre[:E]); f = jax.nn.sigmoid(pre[E:2 * E])
        g = jnp.tanh(pre[2 * E:3 * E]); o = jax.nn.sigmoid(pre[3 * E:])
        c = f * c + i * g
        h = o * jnp.tanh(c)
        return (h, c), None

    (h_enc, _), _ = lax.scan(enc_step, (jnp.zeros(E), jnp.zeros(E)), xv)

    ih = h_enc @ params["wih_d"] + params["b_d"][0]

    def dec_step(carry, _):
        h, c = carry
        pre = ih + h @ params["whh_d"]
        i = jax.nn.sigmoid(pre[:H]); f = jax.nn.sigmoid(pre[H:2 * H])
        g = jnp.tanh(pre[2 * H:3 * H]); o = jax.nn.sigmoid(pre[3 * H:])
        c = f * c + i * g
        h = o * jnp.tanh(c)
        return (h, c), h

    _, hs = lax.scan(dec_step, (jnp.zeros(H), jnp.zeros(H)), None, length=S)
    return hs @ params["wout"].T + params["bout"]  # (S, 1)


if __name__ == "__main__":
    seq_len, n_features, embedding_dim = 8, 1, 32
    batch, block_b = 16, 8
    key = jax.random.PRNGKey(0)
    kx, kb, kp = jax.random.split(key, 3)
    params = init_params(kp, embedding_dim)

    # Module-faithful single-sequence path (B=1, one grid step).
    x = jax.random.normal(kx, (seq_len, n_features), jnp.float32)
    out = jax.block_until_ready(recurrent_autoencoder_forward(x, params))
    ref = reference_forward(x, params)
    assert out.shape == (seq_len, 1), out.shape
    if not bool(jnp.allclose(out, ref, rtol=1e-4, atol=1e-4)):
        raise AssertionError(f"single-seq kernel vs reference mismatch:\n{out}\n{ref}")

    # Batched path: B independent sequences, tiled over a parallel grid axis.
    xs = jax.random.normal(kb, (batch, seq_len, n_features), jnp.float32)
    outs = jax.block_until_ready(
        recurrent_autoencoder_forward_batched(xs, params, block_b=block_b))
    refs = jax.vmap(lambda xi: reference_forward(xi, params))(xs)
    assert outs.shape == (batch, seq_len, 1), outs.shape
    if not bool(jnp.allclose(outs, refs, rtol=1e-4, atol=1e-4)):
        raise AssertionError("batched kernel vs reference mismatch")

    print("KERNEL_OK")
</pallas_src>

<mosaic_0001>
module attributes {stable_mosaic.version = 11 : i64} {
  func.func @_autoencoder_kernel(%arg0: i32, %arg1: memref<1x8xf32, #tpu.memory_space<vmem>>, %arg2: memref<1x128xf32, #tpu.memory_space<vmem>>, %arg3: memref<32x128xf32, #tpu.memory_space<vmem>>, %arg4: memref<1x128xf32, #tpu.memory_space<vmem>>, %arg5: memref<32x256xf32, #tpu.memory_space<vmem>>, %arg6: memref<64x256xf32, #tpu.memory_space<vmem>>, %arg7: memref<1x256xf32, #tpu.memory_space<vmem>>, %arg8: memref<1x64xf32, #tpu.memory_space<vmem>>, %arg9: memref<1x1xf32, #tpu.memory_space<vmem>>, %arg10: memref<1x8xf32, #tpu.memory_space<vmem>>) attributes {dimension_semantics = [#tpu.dimension_semantics<parallel>], iteration_bounds = array<i64: 1>, scalar_prefetch = 0 : i64, scratch_operands = 0 : i64, tpu.core_type = #tpu.core_type<tc>, window_params = [{transform_indices = @transform_0, window_bounds = array<i64: 1, 8>}, {pipeline_mode = #tpu.pipeline_mode<synchronous>, transform_indices = @transform_1, window_bounds = array<i64: 1, 128>}, {pipeline_mode = #tpu.pipeline_mode<synchronous>, transform_indices = @transform_2, window_bounds = array<i64: 32, 128>}, {pipeline_mode = #tpu.pipeline_mode<synchronous>, transform_indices = @transform_3, window_bounds = array<i64: 1, 128>}, {pipeline_mode = #tpu.pipeline_mode<synchronous>, transform_indices = @transform_4, window_bounds = array<i64: 32, 256>}, {pipeline_mode = #tpu.pipeline_mode<synchronous>, transform_indices = @transform_5, window_bounds = array<i64: 64, 256>}, {pipeline_mode = #tpu.pipeline_mode<synchronous>, transform_indices = @transform_6, window_bounds = array<i64: 1, 256>}, {pipeline_mode = #tpu.pipeline_mode<synchronous>, transform_indices = @transform_7, window_bounds = array<i64: 1, 64>}, {pipeline_mode = #tpu.pipeline_mode<synchronous>, transform_indices = @transform_8, window_bounds = array<i64: 1, 1>}, {transform_indices = @transform_9, window_bounds = array<i64: 1, 8>}]} {
    %c0 = arith.constant 0 : index
    %c0_0 = arith.constant 0 : index
    %0 = vector.load %arg1[%c0, %c0_0] : memref<1x8xf32, #tpu.memory_space<vmem>>, vector<1x8xf32>
    %c0_1 = arith.constant 0 : index
    %c0_2 = arith.constant 0 : index
    %1 = vector.load %arg2[%c0_1, %c0_2] : memref<1x128xf32, #tpu.memory_space<vmem>>, vector<1x128xf32>
    %c0_3 = arith.constant 0 : index
    %c0_4 = arith.constant 0 : index
    %2 = vector.load %arg3[%c0_3, %c0_4] : memref<32x128xf32, #tpu.memory_space<vmem>>, vector<32x128xf32>
    %c0_5 = arith.constant 0 : index
    %c0_6 = arith.constant 0 : index
    %3 = vector.load %arg4[%c0_5, %c0_6] : memref<1x128xf32, #tpu.memory_space<vmem>>, vector<1x128xf32>
    %4 = vector.extract_strided_slice %0 {offsets = [0, 0], sizes = [1, 1], strides = [1, 1]} : vector<1x8xf32> to vector<1x1xf32>
    %5 = vector.broadcast %4 : vector<1x1xf32> to vector<1x128xf32>
    %6 = arith.mulf %5, %1 : vector<1x128xf32>
    %7 = arith.addf %6, %3 : vector<1x128xf32>
    %8 = vector.extract_strided_slice %0 {offsets = [0, 1], sizes = [1, 1], strides = [1, 1]} : vector<1x8xf32> to vector<1x1xf32>
    %9 = vector.broadcast %8 : vector<1x1xf32> to vector<1x128xf32>
    %10 = arith.mulf %9, %1 : vector<1x128xf32>
    %11 = arith.addf %10, %3 : vector<1x128xf32>
    %12 = vector.extract_strided_slice %0 {offsets = [0, 2], sizes = [1, 1], strides = [1, 1]} : vector<1x8xf32> to vector<1x1xf32>
    %13 = vector.broadcast %12 : vector<1x1xf32> to vector<1x128xf32>
    %14 = arith.mulf %13, %1 : vector<1x128xf32>
    %15 = arith.addf %14, %3 : vector<1x128xf32>
    %16 = vector.extract_strided_slice %0 {offsets = [0, 3], sizes = [1, 1], strides = [1, 1]} : vector<1x8xf32> to vector<1x1xf32>
    %17 = vector.broadcast %16 : vector<1x1xf32> to vector<1x128xf32>
    %18 = arith.mulf %17, %1 : vector<1x128xf32>
    %19 = arith.addf %18, %3 : vector<1x128xf32>
    %20 = vector.extract_strided_slice %0 {offsets = [0, 4], sizes = [1, 1], strides = [1, 1]} : vector<1x8xf32> to vector<1x1xf32>
    %21 = vector.broadcast %20 : vector<1x1xf32> to vector<1x128xf32>
    %22 = arith.mulf %21, %1 : vector<1x128xf32>
    %23 = arith.addf %22, %3 : vector<1x128xf32>
    %24 = vector.extract_strided_slice %0 {offsets = [0, 5], sizes = [1, 1], strides = [1, 1]} : vector<1x8xf32> to vector<1x1xf32>
    %25 = vector.broadcast %24 : vector<1x1xf32> to vector<1x128xf32>
    %26 = arith.mulf %25, %1 : vector<1x128xf32>
    %27 = arith.addf %26, %3 : vector<1x128xf32>
    %28 = vector.extract_strided_slice %0 {offsets = [0, 6], sizes = [1, 1], strides = [1, 1]} : vector<1x8xf32> to vector<1x1xf32>
    %29 = vector.broadcast %28 : vector<1x1xf32> to vector<1x128xf32>
    %30 = arith.mulf %29, %1 : vector<1x128xf32>
    %31 = arith.addf %30, %3 : vector<1x128xf32>
    %32 = vector.extract_strided_slice %0 {offsets = [0, 7], sizes = [1, 1], strides = [1, 1]} : vector<1x8xf32> to vector<1x1xf32>
    %33 = vector.broadcast %32 : vector<1x1xf32> to vector<1x128xf32>
    %34 = arith.mulf %33, %1 : vector<1x128xf32>
    %35 = arith.addf %34, %3 : vector<1x128xf32>
    %cst = arith.constant 0.000000e+00 : f32
    %36 = vector.broadcast %cst : f32 to vector<1x32xf32>
    %cst_7 = arith.constant 0.000000e+00 : f32
    %37 = vector.broadcast %cst_7 : f32 to vector<1x32xf32>
    %cst_8 = arith.constant dense<0.000000e+00> : vector<1x128xf32>
    %38 = tpu.matmul %36, %2, %cst_8 {dimension_numbers = #tpu.dot_dimension_numbers<[1], [0], [0], [1], [0, 0, 1, 1], [], []>} : vector<1x32xf32>, vector<32x128xf32>, vector<1x128xf32> -> vector<1x128xf32>
    %39 = arith.addf %7, %38 : vector<1x128xf32>
    %40 = arith.negf %39 : vector<1x128xf32>
    %41 = math.exp %40 : vector<1x128xf32>
    %cst_9 = arith.constant 1.000000e+00 : f32
    %42 = vector.broadcast %cst_9 : f32 to vector<1x128xf32>
    %43 = arith.addf %42, %41 : vector<1x128xf32>
    %44 = arith.divf %42, %43 : vector<1x128xf32>
    %45 = math.tanh %39 : vector<1x128xf32>
    %46 = vector.extract_strided_slice %44 {offsets = [0, 0], sizes = [1, 32], strides = [1, 1]} : vector<1x128xf32> to vector<1x32xf32>
    %47 = vector.extract_strided_slice %44 {offsets = [0, 32], sizes = [1, 32], strides = [1, 1]} : vector<1x128xf32> to vector<1x32xf32>
    %48 = vector.extract_strided_slice %45 {offsets = [0, 64], sizes = [1, 32], strides = [1, 1]} : vector<1x128xf32> to vector<1x32xf32>
    %49 = vector.extract_strided_slice %44 {offsets = [0, 96], sizes = [1, 32], strides = [1, 1]} : vector<1x128xf32> to vector<1x32xf32>
    %50 = arith.mulf %47, %37 : vector<1x32xf32>
    %51 = arith.mulf %46, %48 : vector<1x32xf32>
    %52 = arith.addf %50, %51 : vector<1x32xf32>
    %53 = math.tanh %52 : vector<1x32xf32>
    %54 = arith.mulf %49, %53 : vector<1x32xf32>
    %cst_10 = arith.constant dense<0.000000e+00> : vector<1x128xf32>
    %55 = tpu.matmul %54, %2, %cst_10 {dimension_numbers = #tpu.dot_dimension_numbers<[1], [0], [0], [1], [0, 0, 1, 1], [], []>} : vector<1x32xf32>, vector<32x128xf32>, vector<1x128xf32> -> vector<1x128xf32>
    %56 = arith.addf %11, %55 : vector<1x128xf32>
    %57 = arith.negf %56 : vector<1x128xf32>
    %58 = math.exp %57 : vector<1x128xf32>
    %cst_11 = arith.constant 1.000000e+00 : f32
    %59 = vector.broadcast %cst_11 : f32 to vector<1x128xf32>
    %60 = arith.addf %59, %58 : vector<1x128xf32>
    %61 = arith.divf %59, %60 : vector<1x128xf32>
    %62 = math.tanh %56 : vector<1x128xf32>
    %63 = vector.extract_strided_slice %61 {offsets = [0, 0], sizes = [1, 32], strides = [1, 1]} : vector<1x128xf32> to vector<1x32xf32>
    %64 = vector.extract_strided_slice %61 {offsets = [0, 32], sizes = [1, 32], strides = [1, 1]} : vector<1x128xf32> to vector<1x32xf32>
    %65 = vector.extract_strided_slice %62 {offsets = [0, 64], sizes = [1, 32], strides = [1, 1]} : vector<1x128xf32> to vector<1x32xf32>
    %66 = vector.extract_strided_slice %61 {offsets = [0, 96], sizes = [1, 32], strides = [1, 1]} : vector<1x128xf32> to vector<1x32xf32>
    %67 = arith.mulf %64, %52 : vector<1x32xf32>
    %68 = arith.mulf %63, %65 : vector<1x32xf32>
    %69 = arith.addf %67, %68 : vector<1x32xf32>
    %70 = math.tanh %69 : vector<1x32xf32>
    %71 = arith.mulf %66, %70 : vector<1x32xf32>
    %cst_12 = arith.constant dense<0.000000e+00> : vector<1x128xf32>
    %72 = tpu.matmul %71, %2, %cst_12 {dimension_numbers = #tpu.dot_dimension_numbers<[1], [0], [0], [1], [0, 0, 1, 1], [], []>} : vector<1x32xf32>, vector<32x128xf32>, vector<1x128xf32> -> vector<1x128xf32>
    %73 = arith.addf %15, %72 : vector<1x128xf32>
    %74 = arith.negf %73 : vector<1x128xf32>
    %75 = math.exp %74 : vector<1x128xf32>
    %cst_13 = arith.constant 1.000000e+00 : f32
    %76 = vector.broadcast %cst_13 : f32 to vector<1x128xf32>
    %77 = arith.addf %76, %75 : vector<1x128xf32>
    %78 = arith.divf %76, %77 : vector<1x128xf32>
    %79 = math.tanh %73 : vector<1x128xf32>
    %80 = vector.extract_strided_slice %78 {offsets = [0, 0], sizes = [1, 32], strides = [1, 1]} : vector<1x128xf32> to vector<1x32xf32>
    %81 = vector.extract_strided_slice %78 {offsets = [0, 32], sizes = [1, 32], strides = [1, 1]} : vector<1x128xf32> to vector<1x32xf32>
    %82 = vector.extract_strided_slice %79 {offsets = [0, 64], sizes = [1, 32], strides = [1, 1]} : vector<1x128xf32> to vector<1x32xf32>
    %83 = vector.extract_strided_slice %78 {offsets = [0, 96], sizes = [1, 32], strides = [1, 1]} : vector<1x128xf32> to vector<1x32xf32>
    %84 = arith.mulf %81, %69 : vector<1x32xf32>
    %85 = arith.mulf %80, %82 : vector<1x32xf32>
    %86 = arith.addf %84, %85 : vector<1x32xf32>
    %87 = math.tanh %86 : vector<1x32xf32>
    %88 = arith.mulf %83, %87 : vector<1x32xf32>
    %cst_14 = arith.constant dense<0.000000e+00> : vector<1x128xf32>
    %89 = tpu.matmul %88, %2, %cst_14 {dimension_numbers = #tpu.dot_dimension_numbers<[1], [0], [0], [1], [0, 0, 1, 1], [], []>} : vector<1x32xf32>, vector<32x128xf32>, vector<1x128xf32> -> vector<1x128xf32>
    %90 = arith.addf %19, %89 : vector<1x128xf32>
    %91 = arith.negf %90 : vector<1x128xf32>
    %92 = math.exp %91 : vector<1x128xf32>
    %cst_15 = arith.constant 1.000000e+00 : f32
    %93 = vector.broadcast %cst_15 : f32 to vector<1x128xf32>
    %94 = arith.addf %93, %92 : vector<1x128xf32>
    %95 = arith.divf %93, %94 : vector<1x128xf32>
    %96 = math.tanh %90 : vector<1x128xf32>
    %97 = vector.extract_strided_slice %95 {offsets = [0, 0], sizes = [1, 32], strides = [1, 1]} : vector<1x128xf32> to vector<1x32xf32>
    %98 = vector.extract_strided_slice %95 {offsets = [0, 32], sizes = [1, 32], strides = [1, 1]} : vector<1x128xf32> to vector<1x32xf32>
    %99 = vector.extract_strided_slice %96 {offsets = [0, 64], sizes = [1, 32], strides = [1, 1]} : vector<1x128xf32> to vector<1x32xf32>
    %100 = vector.extract_strided_slice %95 {offsets = [0, 96], sizes = [1, 32], strides = [1, 1]} : vector<1x128xf32> to vector<1x32xf32>
    %101 = arith.mulf %98, %86 : vector<1x32xf32>
    %102 = arith.mulf %97, %99 : vector<1x32xf32>
    %103 = arith.addf %101, %102 : vector<1x32xf32>
    %104 = math.tanh %103 : vector<1x32xf32>
    %105 = arith.mulf %100, %104 : vector<1x32xf32>
    %cst_16 = arith.constant dense<0.000000e+00> : vector<1x128xf32>
    %106 = tpu.matmul %105, %2, %cst_16 {dimension_numbers = #tpu.dot_dimension_numbers<[1], [0], [0], [1], [0, 0, 1, 1], [], []>} : vector<1x32xf32>, vector<32x128xf32>, vector<1x128xf32> -> vector<1x128xf32>
    %107 = arith.addf %23, %106 : vector<1x128xf32>
    %108 = arith.negf %107 : vector<1x128xf32>
    %109 = math.exp %108 : vector<1x128xf32>
    %cst_17 = arith.constant 1.000000e+00 : f32
    %110 = vector.broadcast %cst_17 : f32 to vector<1x128xf32>
    %111 = arith.addf %110, %109 : vector<1x128xf32>
    %112 = arith.divf %110, %111 : vector<1x128xf32>
    %113 = math.tanh %107 : vector<1x128xf32>
    %114 = vector.extract_strided_slice %112 {offsets = [0, 0], sizes = [1, 32], strides = [1, 1]} : vector<1x128xf32> to vector<1x32xf32>
    %115 = vector.extract_strided_slice %112 {offsets = [0, 32], sizes = [1, 32], strides = [1, 1]} : vector<1x128xf32> to vector<1x32xf32>
    %116 = vector.extract_strided_slice %113 {offsets = [0, 64], sizes = [1, 32], strides = [1, 1]} : vector<1x128xf32> to vector<1x32xf32>
    %117 = vector.extract_strided_slice %112 {offsets = [0, 96], sizes = [1, 32], strides = [1, 1]} : vector<1x128xf32> to vector<1x32xf32>
    %118 = arith.mulf %115, %103 : vector<1x32xf32>
    %119 = arith.mulf %114, %116 : vector<1x32xf32>
    %120 = arith.addf %118, %119 : vector<1x32xf32>
    %121 = math.tanh %120 : vector<1x32xf32>
    %122 = arith.mulf %117, %121 : vector<1x32xf32>
    %cst_18 = arith.constant dense<0.000000e+00> : vector<1x128xf32>
    %123 = tpu.matmul %122, %2, %cst_18 {dimension_numbers = #tpu.dot_dimension_numbers<[1], [0], [0], [1], [0, 0, 1, 1], [], []>} : vector<1x32xf32>, vector<32x128xf32>, vector<1x128xf32> -> vector<1x128xf32>
    %124 = arith.addf %27, %123 : vector<1x128xf32>
    %125 = arith.negf %124 : vector<1x128xf32>
    %126 = math.exp %125 : vector<1x128xf32>
    %cst_19 = arith.constant 1.000000e+00 : f32
    %127 = vector.broadcast %cst_19 : f32 to vector<1x128xf32>
    %128 = arith.addf %127, %126 : vector<1x128xf32>
    %129 = arith.divf %127, %128 : vector<1x128xf32>
    %130 = math.tanh %124 : vector<1x128xf32>
    %131 = vector.extract_strided_slice %129 {offsets = [0, 0], sizes = [1, 32], strides = [1, 1]} : vector<1x128xf32> to vector<1x32xf32>
    %132 = vector.extract_strided_slice %129 {offsets = [0, 32], sizes = [1, 32], strides = [1, 1]} : vector<1x128xf32> to vector<1x32xf32>
    %133 = vector.extract_strided_slice %130 {offsets = [0, 64], sizes = [1, 32], strides = [1, 1]} : vector<1x128xf32> to vector<1x32xf32>
    %134 = vector.extract_strided_slice %129 {offsets = [0, 96], sizes = [1, 32], strides = [1, 1]} : vector<1x128xf32> to vector<1x32xf32>
    %135 = arith.mulf %132, %120 : vector<1x32xf32>
    %136 = arith.mulf %131, %133 : vector<1x32xf32>
    %137 = arith.addf %135, %136 : vector<1x32xf32>
    %138 = math.tanh %137 : vector<1x32xf32>
    %139 = arith.mulf %134, %138 : vector<1x32xf32>
    %cst_20 = arith.constant dense<0.000000e+00> : vector<1x128xf32>
    %140 = tpu.matmul %139, %2, %cst_20 {dimension_numbers = #tpu.dot_dimension_numbers<[1], [0], [0], [1], [0, 0, 1, 1], [], []>} : vector<1x32xf32>, vector<32x128xf32>, vector<1x128xf32> -> vector<1x128xf32>
    %141 = arith.addf %31, %140 : vector<1x128xf32>
    %142 = arith.negf %141 : vector<1x128xf32>
    %143 = math.exp %142 : vector<1x128xf32>
    %cst_21 = arith.constant 1.000000e+00 : f32
    %144 = vector.broadcast %cst_21 : f32 to vector<1x128xf32>
    %145 = arith.addf %144, %143 : vector<1x128xf32>
    %146 = arith.divf %144, %145 : vector<1x128xf32>
    %147 = math.tanh %141 : vector<1x128xf32>
    %148 = vector.extract_strided_slice %146 {offsets = [0, 0], sizes = [1, 32], strides = [1, 1]} : vector<1x128xf32> to vector<1x32xf32>
    %149 = vector.extract_strided_slice %146 {offsets = [0, 32], sizes = [1, 32], strides = [1, 1]} : vector<1x128xf32> to vector<1x32xf32>
    %150 = vector.extract_strided_slice %147 {offsets = [0, 64], sizes = [1, 32], strides = [1, 1]} : vector<1x128xf32> to vector<1x32xf32>
    %151 = vector.extract_strided_slice %146 {offsets = [0, 96], sizes = [1, 32], strides = [1, 1]} : vector<1x128xf32> to vector<1x32xf32>
    %152 = arith.mulf %149, %137 : vector<1x32xf32>
    %153 = arith.mulf %148, %150 : vector<1x32xf32>
    %154 = arith.addf %152, %153 : vector<1x32xf32>
    %155 = math.tanh %154 : vector<1x32xf32>
    %156 = arith.mulf %151, %155 : vector<1x32xf32>
    %cst_22 = arith.constant dense<0.000000e+00> : vector<1x128xf32>
    %157 = tpu.matmul %156, %2, %cst_22 {dimension_numbers = #tpu.dot_dimension_numbers<[1], [0], [0], [1], [0, 0, 1, 1], [], []>} : vector<1x32xf32>, vector<32x128xf32>, vector<1x128xf32> -> vector<1x128xf32>
    %158 = arith.addf %35, %157 : vector<1x128xf32>
    %159 = arith.negf %158 : vector<1x128xf32>
    %160 = math.exp %159 : vector<1x128xf32>
    %cst_23 = arith.constant 1.000000e+00 : f32
    %161 = vector.broadcast %cst_23 : f32 to vector<1x128xf32>
    %162 = arith.addf %161, %160 : vector<1x128xf32>
    %163 = arith.divf %161, %162 : vector<1x128xf32>
    %164 = math.tanh %158 : vector<1x128xf32>
    %165 = vector.extract_strided_slice %163 {offsets = [0, 0], sizes = [1, 32], strides = [1, 1]} : vector<1x128xf32> to vector<1x32xf32>
    %166 = vector.extract_strided_slice %163 {offsets = [0, 32], sizes = [1, 32], strides = [1, 1]} : vector<1x128xf32> to vector<1x32xf32>
    %167 = vector.extract_strided_slice %164 {offsets = [0, 64], sizes = [1, 32], strides = [1, 1]} : vector<1x128xf32> to vector<1x32xf32>
    %168 = vector.extract_strided_slice %163 {offsets = [0, 96], sizes = [1, 32], strides = [1, 1]} : vector<1x128xf32> to vector<1x32xf32>
    %169 = arith.mulf %166, %154 : vector<1x32xf32>
    %170 = arith.mulf %165, %167 : vector<1x32xf32>
    %171 = arith.addf %169, %170 : vector<1x32xf32>
    %172 = math.tanh %171 : vector<1x32xf32>
    %173 = arith.mulf %168, %172 : vector<1x32xf32>
    %c0_24 = arith.constant 0 : index
    %c0_25 = arith.constant 0 : index
    %174 = vector.load %arg6[%c0_24, %c0_25] : memref<64x256xf32, #tpu.memory_space<vmem>>, vector<64x256xf32>
    %c0_26 = arith.constant 0 : index
    %c0_27 = arith.constant 0 : index
    %175 = vector.load %arg8[%c0_26, %c0_27] : memref<1x64xf32, #tpu.memory_space<vmem>>, vector<1x64xf32>
    %c0_28 = arith.constant 0 : index
    %c0_29 = arith.constant 0 : index
    %176 = vector.load %arg9[%c0_28, %c0_29] : memref<1x1xf32, #tpu.memory_space<vmem>>, vector<1x1xf32>
    %c0_30 = arith.constant 0 : index
    %c0_31 = arith.constant 0 : index
    %177 = vector.load %arg5[%c0_30, %c0_31] : memref<32x256xf32, #tpu.memory_space<vmem>>, vector<32x256xf32>
    %cst_32 = arith.constant dense<0.000000e+00> : vector<1x256xf32>
    %178 = tpu.matmul %173, %177, %cst_32 {dimension_numbers = #tpu.dot_dimension_numbers<[1], [0], [0], [1], [0, 0, 1, 1], [], []>} : vector<1x32xf32>, vector<32x256xf32>, vector<1x256xf32> -> vector<1x256xf32>
    %c0_33 = arith.constant 0 : index
    %c0_34 = arith.constant 0 : index
    %179 = vector.load %arg7[%c0_33, %c0_34] : memref<1x256xf32, #tpu.memory_space<vmem>>, vector<1x256xf32>
    %180 = arith.addf %178, %179 : vector<1x256xf32>
    %cst_35 = arith.constant 0.000000e+00 : f32
    %181 = vector.broadcast %cst_35 : f32 to vector<1x64xf32>
    %cst_36 = arith.constant 0.000000e+00 : f32
    %182 = vector.broadcast %cst_36 : f32 to vector<1x64xf32>
    %cst_37 = arith.constant dense<0.000000e+00> : vector<1x256xf32>
    %183 = tpu.matmul %181, %174, %cst_37 {dimension_numbers = #tpu.dot_dimension_numbers<[1], [0], [0], [1], [0, 0, 1, 1], [], []>} : vector<1x64xf32>, vector<64x256xf32>, vector<1x256xf32> -> vector<1x256xf32>
    %184 = arith.addf %180, %183 : vector<1x256xf32>
    %185 = arith.negf %184 : vector<1x256xf32>
    %186 = math.exp %185 : vector<1x256xf32>
    %cst_38 = arith.constant 1.000000e+00 : f32
    %187 = vector.broadcast %cst_38 : f32 to vector<1x256xf32>
    %188 = arith.addf %187, %186 : vector<1x256xf32>
    %189 = arith.divf %187, %188 : vector<1x256xf32>
    %190 = math.tanh %184 : vector<1x256xf32>
    %191 = vector.extract_strided_slice %189 {offsets = [0, 0], sizes = [1, 64], strides = [1, 1]} : vector<1x256xf32> to vector<1x64xf32>
    %192 = vector.extract_strided_slice %189 {offsets = [0, 64], sizes = [1, 64], strides = [1, 1]} : vector<1x256xf32> to vector<1x64xf32>
    %193 = vector.extract_strided_slice %190 {offsets = [0, 128], sizes = [1, 64], strides = [1, 1]} : vector<1x256xf32> to vector<1x64xf32>
    %194 = vector.extract_strided_slice %189 {offsets = [0, 192], sizes = [1, 64], strides = [1, 1]} : vector<1x256xf32> to vector<1x64xf32>
    %195 = arith.mulf %192, %182 : vector<1x64xf32>
    %196 = arith.mulf %191, %193 : vector<1x64xf32>
    %197 = arith.addf %195, %196 : vector<1x64xf32>
    %198 = math.tanh %197 : vector<1x64xf32>
    %199 = arith.mulf %194, %198 : vector<1x64xf32>
    %200 = arith.mulf %199, %175 : vector<1x64xf32>
    %cst_39 = arith.constant dense<0.000000e+00> : vector<1xf32>
    %201 = vector.multi_reduction <add>, %200, %cst_39 [1] : vector<1x64xf32> to vector<1xf32>
    %202 = vector.shape_cast %201 : vector<1xf32> to vector<1x1xf32>
    %203 = arith.addf %202, %176 : vector<1x1xf32>
    %c0_40 = arith.constant 0 : index
    %c0_41 = arith.constant 0 : index
    %204 = vector.load %arg10[%c0_40, %c0_41] : memref<1x8xf32, #tpu.memory_space<vmem>>, vector<1x1xf32>
    tpu.vector_store %arg10[%c0_40, %c0_41], %203 {strides = array<i32>} : memref<1x8xf32, #tpu.memory_space<vmem>>, vector<1x1xf32>,
    %cst_42 = arith.constant dense<0.000000e+00> : vector<1x256xf32>
    %205 = tpu.matmul %199, %174, %cst_42 {dimension_numbers = #tpu.dot_dimension_numbers<[1], [0], [0], [1], [0, 0, 1, 1], [], []>} : vector<1x64xf32>, vector<64x256xf32>, vector<1x256xf32> -> vector<1x256xf32>
    %206 = arith.addf %180, %205 : vector<1x256xf32>
    %207 = arith.negf %206 : vector<1x256xf32>
    %208 = math.exp %207 : vector<1x256xf32>
    %cst_43 = arith.constant 1.000000e+00 : f32
    %209 = vector.broadcast %cst_43 : f32 to vector<1x256xf32>
    %210 = arith.addf %209, %208 : vector<1x256xf32>
    %211 = arith.divf %209, %210 : vector<1x256xf32>
    %212 = math.tanh %206 : vector<1x256xf32>
    %213 = vector.extract_strided_slice %211 {offsets = [0, 0], sizes = [1, 64], strides = [1, 1]} : vector<1x256xf32> to vector<1x64xf32>
    %214 = vector.extract_strided_slice %211 {offsets = [0, 64], sizes = [1, 64], strides = [1, 1]} : vector<1x256xf32> to vector<1x64xf32>
    %215 = vector.extract_strided_slice %212 {offsets = [0, 128], sizes = [1, 64], strides = [1, 1]} : vector<1x256xf32> to vector<1x64xf32>
    %216 = vector.extract_strided_slice %211 {offsets = [0, 192], sizes = [1, 64], strides = [1, 1]} : vector<1x256xf32> to vector<1x64xf32>
    %217 = arith.mulf %214, %197 : vector<1x64xf32>
    %218 = arith.mulf %213, %215 : vector<1x64xf32>
    %219 = arith.addf %217, %218 : vector<1x64xf32>
    %220 = math.tanh %219 : vector<1x64xf32>
    %221 = arith.mulf %216, %220 : vector<1x64xf32>
    %222 = arith.mulf %221, %175 : vector<1x64xf32>
    %cst_44 = arith.constant dense<0.000000e+00> : vector<1xf32>
    %223 = vector.multi_reduction <add>, %222, %cst_44 [1] : vector<1x64xf32> to vector<1xf32>
    %224 = vector.shape_cast %223 : vector<1xf32> to vector<1x1xf32>
    %225 = arith.addf %224, %176 : vector<1x1xf32>
    %c0_45 = arith.constant 0 : index
    %c1 = arith.constant 1 : index
    %226 = vector.load %arg10[%c0_45, %c1] : memref<1x8xf32, #tpu.memory_space<vmem>>, vector<1x1xf32>
    tpu.vector_store %arg10[%c0_45, %c1], %225 {strides = array<i32>} : memref<1x8xf32, #tpu.memory_space<vmem>>, vector<1x1xf32>,
    %cst_46 = arith.constant dense<0.000000e+00> : vector<1x256xf32>
    %227 = tpu.matmul %221, %174, %cst_46 {dimension_numbers = #tpu.dot_dimension_numbers<[1], [0], [0], [1], [0, 0, 1, 1], [], []>} : vector<1x64xf32>, vector<64x256xf32>, vector<1x256xf32> -> vector<1x256xf32>
    %228 = arith.addf %180, %227 : vector<1x256xf32>
    %229 = arith.negf %228 : vector<1x256xf32>
    %230 = math.exp %229 : vector<1x256xf32>
    %cst_47 = arith.constant 1.000000e+00 : f32
    %231 = vector.broadcast %cst_47 : f32 to vector<1x256xf32>
    %232 = arith.addf %231, %230 : vector<1x256xf32>
    %233 = arith.divf %231, %232 : vector<1x256xf32>
    %234 = math.tanh %228 : vector<1x256xf32>
    %235 = vector.extract_strided_slice %233 {offsets = [0, 0], sizes = [1, 64], strides = [1, 1]} : vector<1x256xf32> to vector<1x64xf32>
    %236 = vector.extract_strided_slice %233 {offsets = [0, 64], sizes = [1, 64], strides = [1, 1]} : vector<1x256xf32> to vector<1x64xf32>
    %237 = vector.extract_strided_slice %234 {offsets = [0, 128], sizes = [1, 64], strides = [1, 1]} : vector<1x256xf32> to vector<1x64xf32>
    %238 = vector.extract_strided_slice %233 {offsets = [0, 192], sizes = [1, 64], strides = [1, 1]} : vector<1x256xf32> to vector<1x64xf32>
    %239 = arith.mulf %236, %219 : vector<1x64xf32>
    %240 = arith.mulf %235, %237 : vector<1x64xf32>
    %241 = arith.addf %239, %240 : vector<1x64xf32>
    %242 = math.tanh %241 : vector<1x64xf32>
    %243 = arith.mulf %238, %242 : vector<1x64xf32>
    %244 = arith.mulf %243, %175 : vector<1x64xf32>
    %cst_48 = arith.constant dense<0.000000e+00> : vector<1xf32>
    %245 = vector.multi_reduction <add>, %244, %cst_48 [1] : vector<1x64xf32> to vector<1xf32>
    %246 = vector.shape_cast %245 : vector<1xf32> to vector<1x1xf32>
    %247 = arith.addf %246, %176 : vector<1x1xf32>
    %c0_49 = arith.constant 0 : index
    %c2 = arith.constant 2 : index
    %248 = vector.load %arg10[%c0_49, %c2] : memref<1x8xf32, #tpu.memory_space<vmem>>, vector<1x1xf32>
    tpu.vector_store %arg10[%c0_49, %c2], %247 {strides = array<i32>} : memref<1x8xf32, #tpu.memory_space<vmem>>, vector<1x1xf32>,
    %cst_50 = arith.constant dense<0.000000e+00> : vector<1x256xf32>
    %249 = tpu.matmul %243, %174, %cst_50 {dimension_numbers = #tpu.dot_dimension_numbers<[1], [0], [0], [1], [0, 0, 1, 1], [], []>} : vector<1x64xf32>, vector<64x256xf32>, vector<1x256xf32> -> vector<1x256xf32>
    %250 = arith.addf %180, %249 : vector<1x256xf32>
    %251 = arith.negf %250 : vector<1x256xf32>
    %252 = math.exp %251 : vector<1x256xf32>
    %cst_51 = arith.constant 1.000000e+00 : f32
    %253 = vector.broadcast %cst_51 : f32 to vector<1x256xf32>
    %254 = arith.addf %253, %252 : vector<1x256xf32>
    %255 = arith.divf %253, %254 : vector<1x256xf32>
    %256 = math.tanh %250 : vector<1x256xf32>
    %257 = vector.extract_strided_slice %255 {offsets = [0, 0], sizes = [1, 64], strides = [1, 1]} : vector<1x256xf32> to vector<1x64xf32>
    %258 = vector.extract_strided_slice %255 {offsets = [0, 64], sizes = [1, 64], strides = [1, 1]} : vector<1x256xf32> to vector<1x64xf32>
    %259 = vector.extract_strided_slice %256 {offsets = [0, 128], sizes = [1, 64], strides = [1, 1]} : vector<1x256xf32> to vector<1x64xf32>
    %260 = vector.extract_strided_slice %255 {offsets = [0, 192], sizes = [1, 64], strides = [1, 1]} : vector<1x256xf32> to vector<1x64xf32>
    %261 = arith.mulf %258, %241 : vector<1x64xf32>
    %262 = arith.mulf %257, %259 : vector<1x64xf32>
    %263 = arith.addf %261, %262 : vector<1x64xf32>
    %264 = math.tanh %263 : vector<1x64xf32>
    %265 = arith.mulf %260, %264 : vector<1x64xf32>
    %266 = arith.mulf %265, %175 : vector<1x64xf32>
    %cst_52 = arith.constant dense<0.000000e+00> : vector<1xf32>
    %267 = vector.multi_reduction <add>, %266, %cst_52 [1] : vector<1x64xf32> to vector<1xf32>
    %268 = vector.shape_cast %267 : vector<1xf32> to vector<1x1xf32>
    %269 = arith.addf %268, %176 : vector<1x1xf32>
    %c0_53 = arith.constant 0 : index
    %c3 = arith.constant 3 : index
    %270 = vector.load %arg10[%c0_53, %c3] : memref<1x8xf32, #tpu.memory_space<vmem>>, vector<1x1xf32>
    tpu.vector_store %arg10[%c0_53, %c3], %269 {strides = array<i32>} : memref<1x8xf32, #tpu.memory_space<vmem>>, vector<1x1xf32>,
    %cst_54 = arith.constant dense<0.000000e+00> : vector<1x256xf32>
    %271 = tpu.matmul %265, %174, %cst_54 {dimension_numbers = #tpu.dot_dimension_numbers<[1], [0], [0], [1], [0, 0, 1, 1], [], []>} : vector<1x64xf32>, vector<64x256xf32>, vector<1x256xf32> -> vector<1x256xf32>
    %272 = arith.addf %180, %271 : vector<1x256xf32>
    %273 = arith.negf %272 : vector<1x256xf32>
    %274 = math.exp %273 : vector<1x256xf32>
    %cst_55 = arith.constant 1.000000e+00 : f32
    %275 = vector.broadcast %cst_55 : f32 to vector<1x256xf32>
    %276 = arith.addf %275, %274 : vector<1x256xf32>
    %277 = arith.divf %275, %276 : vector<1x256xf32>
    %278 = math.tanh %272 : vector<1x256xf32>
    %279 = vector.extract_strided_slice %277 {offsets = [0, 0], sizes = [1, 64], strides = [1, 1]} : vector<1x256xf32> to vector<1x64xf32>
    %280 = vector.extract_strided_slice %277 {offsets = [0, 64], sizes = [1, 64], strides = [1, 1]} : vector<1x256xf32> to vector<1x64xf32>
    %281 = vector.extract_strided_slice %278 {offsets = [0, 128], sizes = [1, 64], strides = [1, 1]} : vector<1x256xf32> to vector<1x64xf32>
    %282 = vector.extract_strided_slice %277 {offsets = [0, 192], sizes = [1, 64], strides = [1, 1]} : vector<1x256xf32> to vector<1x64xf32>
    %283 = arith.mulf %280, %263 : vector<1x64xf32>
    %284 = arith.mulf %279, %281 : vector<1x64xf32>
    %285 = arith.addf %283, %284 : vector<1x64xf32>
    %286 = math.tanh %285 : vector<1x64xf32>
    %287 = arith.mulf %282, %286 : vector<1x64xf32>
    %288 = arith.mulf %287, %175 : vector<1x64xf32>
    %cst_56 = arith.constant dense<0.000000e+00> : vector<1xf32>
    %289 = vector.multi_reduction <add>, %288, %cst_56 [1] : vector<1x64xf32> to vector<1xf32>
    %290 = vector.shape_cast %289 : vector<1xf32> to vector<1x1xf32>
    %291 = arith.addf %290, %176 : vector<1x1xf32>
    %c0_57 = arith.constant 0 : index
    %c4 = arith.constant 4 : index
    %292 = vector.load %arg10[%c0_57, %c4] : memref<1x8xf32, #tpu.memory_space<vmem>>, vector<1x1xf32>
    tpu.vector_store %arg10[%c0_57, %c4], %291 {strides = array<i32>} : memref<1x8xf32, #tpu.memory_space<vmem>>, vector<1x1xf32>,
    %cst_58 = arith.constant dense<0.000000e+00> : vector<1x256xf32>
    %293 = tpu.matmul %287, %174, %cst_58 {dimension_numbers = #tpu.dot_dimension_numbers<[1], [0], [0], [1], [0, 0, 1, 1], [], []>} : vector<1x64xf32>, vector<64x256xf32>, vector<1x256xf32> -> vector<1x256xf32>
    %294 = arith.addf %180, %293 : vector<1x256xf32>
    %295 = arith.negf %294 : vector<1x256xf32>
    %296 = math.exp %295 : vector<1x256xf32>
    %cst_59 = arith.constant 1.000000e+00 : f32
    %297 = vector.broadcast %cst_59 : f32 to vector<1x256xf32>
    %298 = arith.addf %297, %296 : vector<1x256xf32>
    %299 = arith.divf %297, %298 : vector<1x256xf32>
    %300 = math.tanh %294 : vector<1x256xf32>
    %301 = vector.extract_strided_slice %299 {offsets = [0, 0], sizes = [1, 64], strides = [1, 1]} : vector<1x256xf32> to vector<1x64xf32>
    %302 = vector.extract_strided_slice %299 {offsets = [0, 64], sizes = [1, 64], strides = [1, 1]} : vector<1x256xf32> to vector<1x64xf32>
    %303 = vector.extract_strided_slice %300 {offsets = [0, 128], sizes = [1, 64], strides = [1, 1]} : vector<1x256xf32> to vector<1x64xf32>
    %304 = vector.extract_strided_slice %299 {offsets = [0, 192], sizes = [1, 64], strides = [1, 1]} : vector<1x256xf32> to vector<1x64xf32>
    %305 = arith.mulf %302, %285 : vector<1x64xf32>
    %306 = arith.mulf %301, %303 : vector<1x64xf32>
    %307 = arith.addf %305, %306 : vector<1x64xf32>
    %308 = math.tanh %307 : vector<1x64xf32>
    %309 = arith.mulf %304, %308 : vector<1x64xf32>
    %310 = arith.mulf %309, %175 : vector<1x64xf32>
    %cst_60 = arith.constant dense<0.000000e+00> : vector<1xf32>
    %311 = vector.multi_reduction <add>, %310, %cst_60 [1] : vector<1x64xf32> to vector<1xf32>
    %312 = vector.shape_cast %311 : vector<1xf32> to vector<1x1xf32>
    %313 = arith.addf %312, %176 : vector<1x1xf32>
    %c0_61 = arith.constant 0 : index
    %c5 = arith.constant 5 : index
    %314 = vector.load %arg10[%c0_61, %c5] : memref<1x8xf32, #tpu.memory_space<vmem>>, vector<1x1xf32>
    tpu.vector_store %arg10[%c0_61, %c5], %313 {strides = array<i32>} : memref<1x8xf32, #tpu.memory_space<vmem>>, vector<1x1xf32>,
    %cst_62 = arith.constant dense<0.000000e+00> : vector<1x256xf32>
    %315 = tpu.matmul %309, %174, %cst_62 {dimension_numbers = #tpu.dot_dimension_numbers<[1], [0], [0], [1], [0, 0, 1, 1], [], []>} : vector<1x64xf32>, vector<64x256xf32>, vector<1x256xf32> -> vector<1x256xf32>
    %316 = arith.addf %180, %315 : vector<1x256xf32>
    %317 = arith.negf %316 : vector<1x256xf32>
    %318 = math.exp %317 : vector<1x256xf32>
    %cst_63 = arith.constant 1.000000e+00 : f32
    %319 = vector.broadcast %cst_63 : f32 to vector<1x256xf32>
    %320 = arith.addf %319, %318 : vector<1x256xf32>
    %321 = arith.divf %319, %320 : vector<1x256xf32>
    %322 = math.tanh %316 : vector<1x256xf32>
    %323 = vector.extract_strided_slice %321 {offsets = [0, 0], sizes = [1, 64], strides = [1, 1]} : vector<1x256xf32> to vector<1x64xf32>
    %324 = vector.extract_strided_slice %321 {offsets = [0, 64], sizes = [1, 64], strides = [1, 1]} : vector<1x256xf32> to vector<1x64xf32>
    %325 = vector.extract_strided_slice %322 {offsets = [0, 128], sizes = [1, 64], strides = [1, 1]} : vector<1x256xf32> to vector<1x64xf32>
    %326 = vector.extract_strided_slice %321 {offsets = [0, 192], sizes = [1, 64], strides = [1, 1]} : vector<1x256xf32> to vector<1x64xf32>
    %327 = arith.mulf %324, %307 : vector<1x64xf32>
    %328 = arith.mulf %323, %325 : vector<1x64xf32>
    %329 = arith.addf %327, %328 : vector<1x64xf32>
    %330 = math.tanh %329 : vector<1x64xf32>
    %331 = arith.mulf %326, %330 : vector<1x64xf32>
    %332 = arith.mulf %331, %175 : vector<1x64xf32>
    %cst_64 = arith.constant dense<0.000000e+00> : vector<1xf32>
    %333 = vector.multi_reduction <add>, %332, %cst_64 [1] : vector<1x64xf32> to vector<1xf32>
    %334 = vector.shape_cast %333 : vector<1xf32> to vector<1x1xf32>
    %335 = arith.addf %334, %176 : vector<1x1xf32>
    %c0_65 = arith.constant 0 : index
    %c6 = arith.constant 6 : index
    %336 = vector.load %arg10[%c0_65, %c6] : memref<1x8xf32, #tpu.memory_space<vmem>>, vector<1x1xf32>
    tpu.vector_store %arg10[%c0_65, %c6], %335 {strides = array<i32>} : memref<1x8xf32, #tpu.memory_space<vmem>>, vector<1x1xf32>,
    %cst_66 = arith.constant dense<0.000000e+00> : vector<1x256xf32>
    %337 = tpu.matmul %331, %174, %cst_66 {dimension_numbers = #tpu.dot_dimension_numbers<[1], [0], [0], [1], [0, 0, 1, 1], [], []>} : vector<1x64xf32>, vector<64x256xf32>, vector<1x256xf32> -> vector<1x256xf32>
    %338 = arith.addf %180, %337 : vector<1x256xf32>
    %339 = arith.negf %338 : vector<1x256xf32>
    %340 = math.exp %339 : vector<1x256xf32>
    %cst_67 = arith.constant 1.000000e+00 : f32
    %341 = vector.broadcast %cst_67 : f32 to vector<1x256xf32>
    %342 = arith.addf %341, %340 : vector<1x256xf32>
    %343 = arith.divf %341, %342 : vector<1x256xf32>
    %344 = math.tanh %338 : vector<1x256xf32>
    %345 = vector.extract_strided_slice %343 {offsets = [0, 0], sizes = [1, 64], strides = [1, 1]} : vector<1x256xf32> to vector<1x64xf32>
    %346 = vector.extract_strided_slice %343 {offsets = [0, 64], sizes = [1, 64], strides = [1, 1]} : vector<1x256xf32> to vector<1x64xf32>
    %347 = vector.extract_strided_slice %344 {offsets = [0, 128], sizes = [1, 64], strides = [1, 1]} : vector<1x256xf32> to vector<1x64xf32>
    %348 = vector.extract_strided_slice %343 {offsets = [0, 192], sizes = [1, 64], strides = [1, 1]} : vector<1x256xf32> to vector<1x64xf32>
    %349 = arith.mulf %346, %329 : vector<1x64xf32>
    %350 = arith.mulf %345, %347 : vector<1x64xf32>
    %351 = arith.addf %349, %350 : vector<1x64xf32>
    %352 = math.tanh %351 : vector<1x64xf32>
    %353 = arith.mulf %348, %352 : vector<1x64xf32>
    %354 = arith.mulf %353, %175 : vector<1x64xf32>
    %cst_68 = arith.constant dense<0.000000e+00> : vector<1xf32>
    %355 = vector.multi_reduction <add>, %354, %cst_68 [1] : vector<1x64xf32> to vector<1xf32>
    %356 = vector.shape_cast %355 : vector<1xf32> to vector<1x1xf32>
    %357 = arith.addf %356, %176 : vector<1x1xf32>
    %c0_69 = arith.constant 0 : index
    %c7 = arith.constant 7 : index
    %358 = vector.load %arg10[%c0_69, %c7] : memref<1x8xf32, #tpu.memory_space<vmem>>, vector<1x1xf32>
    tpu.vector_store %arg10[%c0_69, %c7], %357 {strides = array<i32>} : memref<1x8xf32, #tpu.memory_space<vmem>>, vector<1x1xf32>,
    return
  }
  func.func @transform_0(%arg0: i32) -> (i32, i32) {
    %c0_i32 = arith.constant 0 : i32
    %c0_i32_0 = arith.constant 0 : i32
    return %arg0, %c0_i32 : i32, i32
  }
  func.func @transform_1(%arg0: i32) -> (i32, i32) {
    %c0_i32 = arith.constant 0 : i32
    %c0_i32_0 = arith.constant 0 : i32
    %c0_i32_1 = arith.constant 0 : i32
    return %c0_i32, %c0_i32_0 : i32, i32
  }
  func.func @transform_2(%arg0: i32) -> (i32, i32) {
    %c0_i32 = arith.constant 0 : i32
    %c0_i32_0 = arith.constant 0 : i32
    %c0_i32_1 = arith.constant 0 : i32
    return %c0_i32, %c0_i32_0 : i32, i32
  }
  func.func @transform_3(%arg0: i32) -> (i32, i32) {
    %c0_i32 = arith.constant 0 : i32
    %c0_i32_0 = arith.constant 0 : i32
    %c0_i32_1 = arith.constant 0 : i32
    return %c0_i32, %c0_i32_0 : i32, i32
  }
  func.func @transform_4(%arg0: i32) -> (i32, i32) {
    %c0_i32 = arith.constant 0 : i32
    %c0_i32_0 = arith.constant 0 : i32
    %c0_i32_1 = arith.constant 0 : i32
    return %c0_i32, %c0_i32_0 : i32, i32
  }
  func.func @transform_5(%arg0: i32) -> (i32, i32) {
    %c0_i32 = arith.constant 0 : i32
    %c0_i32_0 = arith.constant 0 : i32
    %c0_i32_1 = arith.constant 0 : i32
    return %c0_i32, %c0_i32_0 : i32, i32
  }
  func.func @transform_6(%arg0: i32) -> (i32, i32) {
    %c0_i32 = arith.constant 0 : i32
    %c0_i32_0 = arith.constant 0 : i32
    %c0_i32_1 = arith.constant 0 : i32
    return %c0_i32, %c0_i32_0 : i32, i32
  }
  func.func @transform_7(%arg0: i32) -> (i32, i32) {
    %c0_i32 = arith.constant 0 : i32
    %c0_i32_0 = arith.constant 0 : i32
    %c0_i32_1 = arith.constant 0 : i32
    return %c0_i32, %c0_i32_0 : i32, i32
  }
  func.func @transform_8(%arg0: i32) -> (i32, i32) {
    %c0_i32 = arith.constant 0 : i32
    %c0_i32_0 = arith.constant 0 : i32
    %c0_i32_1 = arith.constant 0 : i32
    return %c0_i32, %c0_i32_0 : i32, i32
  }
  func.func @transform_9(%arg0: i32) -> (i32, i32) {
    %c0_i32 = arith.constant 0 : i32
    %c0_i32_0 = arith.constant 0 : i32
    return %arg0, %c0_i32 : i32, i32
  }
}

</mosaic_0001>

<bundles_post_ra>
// kernel: tpu_custom_call.1
= control target key start
LH: loop header
LB: loop body
LE: loop exit
PB: predicated region body
PF: predicated region fallthrough
CT: control target
= control target key end

     0   :  { %s3081_s0 = inlined_call_operand.vmem [shape: f32[1,8], index: 0, kind: input, shape index: {}]   ;;  %s3082_s1 = inlined_call_operand.hbm [shape: f32[1,128], index: 1, kind: input, shape index: {}]   ;;  %s3083_s2 = inlined_call_operand.hbm [shape: f32[32,128], index: 2, kind: input, shape index: {}]   ;;  %s3084_s3 = inlined_call_operand.vmem [shape: f32[1,128], index: 3, kind: input, shape index: {}]   ;;  %s3085_s4 = inlined_call_operand.hbm [shape: f32[32,256], index: 4, kind: input, shape index: {}]   ;;  %s3086_s5 = inlined_call_operand.hbm [shape: f32[64,256], index: 5, kind: input, shape index: {}]   ;;  %s3087_s6 = inlined_call_operand.vmem [shape: f32[1,256], index: 6, kind: input, shape index: {}]   ;;  %s3088_s7 = inlined_call_operand.vmem [shape: f32[1,64], index: 7, kind: input, shape index: {}]   ;;  %s3089_s8 = inlined_call_operand.<no memory space> [shape: f32[1,1], index: 8, kind: input, shape index: {}]   ;;  %s3090_s9 = inlined_call_operand.hbm [shape: f32[1,8], index: 9, kind: output, shape index: {}]  }
   0x1   :  { %v14_v0 = vstv %s3089_s8 }
   0x2   :  { %15 = vst [vmem:[#allocation2] sm:$0x1] %v14_v0 }
   0x3   :  { %16 = vsyncpa [#allocation4], 0 }
   0x4   :  { %17 = vsyncpa [#allocation7], 0 }
   0x5   :  { %18 = vsyncpa [#allocation10], 0 }
   0x6   :  { %19 = vsyncpa [#allocation5], 0  ;;  %s2533_s11 = smov [#allocation6]  }
   0x7   :  { %s37_s12 = sshll.u32 %s2533_s11, 4  ;;  %s38_s12 = int_to_ptr.vmem [resolvable:$true] %s37_s12 }
   0x8   :  { %s2433_s13 = scalar_lea.vmem %s38_s12, 512  ;;  %p2438_p1 = scmp.lt.s32.totalorder %s38_s12, %s38_s12 }
   0x9   :  { %p2434_p0 = scmp.ne.s32.totalorder %s38_s12, %s2433_s13  ;;  %p2439_p2 = scmp.lt.s32.totalorder %s2433_s13, %s2433_s13 }
   0xb   :  { %p2440_p3 = por %p2439_p2, %p2438_p1 }
   0xd   :  { %p2441_p4 = pnand %p2440_p3, %p2434_p0 }
   0xf   :  { %2444 = shalt.err (!%p2441_p4)
}
  0x10   :  { %s2534_s14 = smov 128   ;;  %s2535_s15 = smov 8  }
  0x11   :  { %43 = dma.hbm_to_vmem [thread:$0]  %s3083_s2, 512, %s38_s12, [#allocation7], %s2534_s14, %s2534_s14, %s2535_s15  }
  0x12   :  { %s2536_s8 = smov [#allocation3]   ;;  %s2537_s19 = smov [#allocation8]  }
  0x13   :  { %s28_s18 = sshll.u32 %s2536_s8, 4  ;;  %s51_s20 = sshll.u32 %s2537_s19, 4  ;;  %s29_s18 = int_to_ptr.vmem [resolvable:$true] %s28_s18  ;;  %s52_s20 = int_to_ptr.vmem [resolvable:$true] %s51_s20 }
  0x14   :  { %s2453_s21 = scalar_lea.vmem %s29_s18, 16  ;;  %s2457_s22 = scalar_lea.vmem %s29_s18, 32 }
  0x15   :  { %p2454_p5 = scmp.ne.s32.totalorder %s29_s18, %s2453_s21  ;;  %p2458_p6 = scmp.lt.s32.totalorder %s29_s18, %s29_s18 }
  0x16   :  { %p2459_p7 = scmp.lt.s32.totalorder %s2457_s22, %s2453_s21 }
  0x18   :  { %p2460_p8 = por %p2459_p7, %p2458_p6 }
  0x1a   :  { %p2461_p9 = pnand %p2460_p8, %p2454_p5 }
  0x1c   :  { %2464 = shalt.err (!%p2461_p9)
}
  0x1d   :  { %31 = dma.hbm_to_vmem [thread:$0]  %s3082_s1, 16, %s29_s18, [#allocation4]  }
  0x1e   :  { %s2473_s25 = scalar_lea.vmem %s52_s20, 1024  ;;  %p2478_p11 = scmp.lt.s32.totalorder %s52_s20, %s52_s20 }
  0x1f   :  { %p2474_p10 = scmp.ne.s32.totalorder %s52_s20, %s2473_s25  ;;  %p2479_p12 = scmp.lt.s32.totalorder %s2473_s25, %s2473_s25 }
  0x21   :  { %p2480_p13 = por %p2479_p12, %p2478_p11 }
  0x23   :  { %p2481_p0 = pnand %p2480_p13, %p2474_p10 }
  0x25   :  { %2484 = shalt.err (!%p2481_p0)
}
  0x26   :  { %s2538_s2 = smov 256   ;;  %s2539_s26 = smov 16  }
  0x27   :  { %57 = dma.hbm_to_vmem [thread:$0]  %s3085_s4, 1024, %s52_s20, [#allocation7], %s2538_s2, %s2538_s2, %s2539_s26  }
  0x28   :  { %s2540_s29 = smov [#allocation9]  }
  0x29   :  { %s63_s30 = sshll.u32 %s2540_s29, 4  ;;  %s64_s30 = int_to_ptr.vmem [resolvable:$true] %s63_s30 }
  0x2a   :  { %s2493_s10 = scalar_lea.vmem %s64_s30, 2048  ;;  %p2498_p2 = scmp.lt.s32.totalorder %s64_s30, %s64_s30 }
  0x2b   :  { %p2494_p1 = scmp.ne.s32.totalorder %s64_s30, %s2493_s10  ;;  %p2499_p3 = scmp.lt.s32.totalorder %s2493_s10, %s2493_s10 }
  0x2d   :  { %p2500_p4 = por %p2499_p3, %p2498_p2 }
  0x2f   :  { %p2501_p5 = pnand %p2500_p4, %p2494_p1 }
  0x31   :  { %2504 = shalt.err (!%p2501_p5)
}
  0x32   :  { %69 = dma.hbm_to_vmem [thread:$0]  %s3086_s5, 2048, %s64_s30, [#allocation10], %s2538_s2, %s2538_s2, %s2539_s26  }
  0x33   :  { %2525 = dma.done.wait [#allocation4], 16  }
  0x34   :  { %2526 = vsyncadd [#allocation4], 4294967280 }
  0x35   :  { %2527 = dma.done.wait [#allocation7], 1536  }
  0x36   :  { %2528 = vsyncadd [#allocation7], 4294965760 }
  0x37   :  { %2529 = dma.done.wait [#allocation10], 2048  }
  0x38   :  { %2530 = vsyncadd [#allocation10], 4294965248  ;;  %v2541_v1 = vmov 0.0   ;;  %vm2542_vm0 = vmmov 0   ;;  %v2543_v2 = vmov 0   ;;  %v2632_v3 = vld [vmem:[#allocation6 + $0x18] sm:$0xff]  ;;  %v100_v8 = vlaneseq }
  0x39   :  { %2141 = vmatprep.subr.mxu0 %v2541_v1  ;;  %2149 = vmatprep.mubr.msk.f32.mxu0 %vm2542_vm0, %v2541_v1  ;;  %v2634_v4 = vld [vmem:[#allocation6 + $0x10] sm:$0xff]  ;;  %v2640_v5 = vld [vmem:[%s3081_s0] sm:$0x1]  ;;  %v2644_v6 = vld [vmem:[#allocation6 + $0x8] sm:$0xff]  ;;  %s2544_s13 = smov 64   ;;  %v2546_v31 = vmov 1  }
  0x3a   :  { %2257 = vset.pattern.permute.xlu0 %v2543_v2  ;;  %2152 = vmatprep.subr.mxu1 %v2541_v1  ;;  %v2650_v7 = vld [vmem:[#allocation6] sm:$0xff]  ;;  %v2673_v9 = vshrl.u32 %v100_v8, 7  ;;  %v2679_v13 = vld [vmem:[#allocation3] sm:$0x1]  ;;  %v2685_v15 = vld [vmem:[%s3084_s3] sm:$0x1] }
  0x3b   :  { %2160 = vmatprep.mubr.msk.f32.mxu1 %vm2542_vm0, %v2541_v1  ;;  %2142 = vmatpush3.msra.mxu0 %v2632_v3  ;;  %s2545_s3 = smov 32   ;;  %vm176_vm1 = vcmask 261120   ;;  %v2547_v54 = vmov 2   ;;  %vm1121_vm2 = vcmask 523264   ;;  %vm1232_vm3 = vcmask 516096   ;;  %s2554_s17 = smov 2  }
  0x3c   :  { %2153 = vmatpush3.msra.mxu1 %v2632_v3  ;;  %2143 = vmatprep.subr.mxu0 %v2541_v1  ;;  %v2676_v10 = vsub.s32 0, %v2673_v9  ;;  %vm1237_vm4 = vcmask 0   ;;  %vm1352_vm5 = vcmask 8200   ;;  %s2555_s8 = smov 4   ;;  %vm1467_vm6 = vcmask 16400   ;;  %s2556_s18 = smov 3  }
  0x3d   :  { %97 = vperm.xlu0 %2257, %v2640_v5   ;;  %2144 = vmatpush3.msra.mxu0 %v2634_v4  ;;  %s2557_s19 = smov 5   ;;  %s2558_s20 = smov 6   ;;  %vm1582_vm7 = vcmask 24600   ;;  %vm1697_vm8 = vcmask 32800   ;;  %vm1812_vm9 = vcmask 41000   ;;  %vm1927_vm10 = vcmask 49200  }
  0x3e   :  { %2154 = vmatprep.subr.mxu1 %v2541_v1  ;;  %2145 = vmatprep.subr.mxu0 %v2541_v1  ;;  %s2559_s21 = smov 7   ;;  %s2560_s22 = smov [#allocation11]   ;;  %vm2042_vm11 = vcmask 57400  }
  0x3f   :  { %2155 = vmatpush3.msra.mxu1 %v2634_v4  ;;  %2146 = vmatpush3.msra.mxu0 %v2644_v6  ;;  %s2050_s23 = sshll.u32 %s2560_s22, 4  ;;  %s2051_s23 = int_to_ptr.vmem [resolvable:$true] %s2050_s23 }
  0x40   :  { %2156 = vmatprep.subr.mxu1 %v2541_v1  ;;  %2147 = vmatprep.subr.mxu0 %v2541_v1  ;;  %s2505_s24 = scalar_lea.vmem %s2051_s23, 16  ;;  %s2509_s25 = scalar_lea.vmem %s2051_s23, 32 }
  0x41   :  { %2157 = vmatpush3.msra.mxu1 %v2644_v6  ;;  %2148 = vmatpush3.msra.mxu0 %v2650_v7  ;;  %p2506_p6 = scmp.ne.s32.totalorder %s2051_s23, %s2505_s24  ;;  %p2510_p7 = scmp.lt.s32.totalorder %s2051_s23, %s2051_s23 }
  0x42   :  { %2158 = vmatprep.subr.mxu1 %v2541_v1  ;;  %2150 = vmatmul.mubr.f32.vlgmr.msra.gmra.mxu0 %v2541_v1  ;;  %p2511_p8 = scmp.lt.s32.totalorder %s2509_s25, %s2505_s24 }
  0x43   :  { %2159 = vmatpush3.msra.mxu1 %v2650_v7  ;;  %2163 = vmatprep.subr.mxu0 %v2541_v1 }
  0x44   :  { %2171 = vmatprep.mubr.msk.f32.mxu0 %vm2542_vm0, %v2541_v1  ;;  %2164 = vmatpush3.msra.mxu0 %v2632_v3  ;;  %p2512_p9 = por %p2511_p8, %p2510_p7 }
  0x45   :  { %2174 = vmatprep.subr.mxu1 %v2541_v1  ;;  %2165 = vmatprep.subr.mxu0 %v2541_v1 }
  0x46   :  { %2166 = vmatpush3.msra.mxu0 %v2634_v4  ;;  %2258 = vset.pattern.permute.xlu1 %v2546_v31  ;;  %p2513_p10 = pnand %p2512_p9, %p2506_p6 }
  0x47   :  { %2167 = vmatprep.subr.mxu0 %v2541_v1  ;;  %2259 = vset.pattern.permute.xlu0 %v2547_v54 }
  0x48   :  { %2168 = vmatpush3.msra.mxu0 %v2644_v6 }
  0x49   :  { %2169 = vmatprep.subr.mxu0 %v2541_v1 }
  0x4a   :  { %2170 = vmatpush3.msra.mxu0 %v2650_v7 }
  0x4b   :  { %2185 = vmatprep.subr.mxu0 %v2541_v1 }
  0xb8   :  { %v98_v11 = vpop.permute.xlu0 %97 }
  0xb9   :  { %v103_v12 = vrot.slane %v98_v11, %v2676_v10 }
  0xbb   :  { %v104_v14 = vmul.f32 %v103_v12, %v2679_v13 }
  0xbd   :  { %v105_v16 = vadd.f32 %v104_v14, %v2685_v15 }
 0x102   :  { %v246_v17 = vpop.f32.mrf.mxu0 }
 0x103   :  { %v250_v18 = vadd.f32 %v246_v17, %v105_v16 }
 0x104   :  { %v2151_v19 = vpop.f32.mrf.mxu0 }
 0x105   :  { %2265 = vtanh.f32 %v250_v18  ;;  %v2061_v21 = vmul.f32 -1.442695, %v250_v18 }
 0x107   :  { %2267 = vpow2.f32 %v2061_v21 }
 0x112   :  { %v2266_v20 = vpop.eup %2265 }
 0x113   :  { %260 = vrot.lane.b32.xlu0 %v2266_v20, %s2544_s13 }
 0x114   :  { %v2268_v22 = vpop.eup %2267 }
 0x115   :  { %v254_v23 = vadd.f32 1.0, %v2268_v22 }
 0x117   :  { %2269 = vrcp.f32 %v254_v23  ;;  %v2548_v23 = vmov 3  }
 0x124   :  { %v2270_v24 = vpop.eup %2269 }
 0x125   :  { %v258_v27 = vmul.f32 0.0, %v2270_v24 }
 0x185   :  { %v261_v25 = vpop.permute.xlu0 %260 }
 0x186   :  { %v263_v26 = vmul.f32 %v2270_v24, %v261_v25 }
 0x188   :  { %265 = vrot.lane.b32.xlu1 %v263_v26, %s2545_s3 }
 0x1fa   :  { %v266_v28 = vpop.permute.xlu1 %265 }
 0x1fb   :  { %v268_v29 = vadd.f32 %v266_v28, %v258_v27 }
 0x1fd   :  { %2271 = vtanh.f32 %v268_v29 }
 0x20a   :  { %v2272_v30 = vpop.eup %2271 }
 0x20b   :  { %271 = vrot.lane.b32.xlu1 %v2272_v30, %s2544_s13 }
 0x20f   :  { %107 = vperm.xlu1 %2258, %v2640_v5  }
 0x27d   :  { %v272_v32 = vpop.permute.xlu1 %271 }
 0x27e   :  { %v274_v33 = vmul.f32 %v2270_v24, %v272_v32 }
 0x280   :  { %v279_v34 = vrot.slane %v274_v33, %v2676_v10 }
 0x282   :  { %280 = vrot.lane.b32.xlu0 %v279_v34, %s2545_s3 }
 0x28a   :  { %v108_v36 = vpop.permute.xlu1 %107 }
 0x28b   :  { %v113_v37 = vrot.slane %v108_v36, %v2676_v10 }
 0x28d   :  { %v114_v38 = vmul.f32 %v113_v37, %v2679_v13 }
 0x28f   :  { %v115_v39 = vadd.f32 %v114_v38, %v2685_v15 }
 0x2f4   :  { %v281_v35 = vpop.permute.xlu0 %280 }
 0x2f5   :  { %2161 = vmatmul.mubr.msk.f32.vlgmr.msra.gmra.mxu1 %vm176_vm1, %v281_v35 }
 0x2f6   :  { %2175 = vmatpush3.msra.mxu1 %v2632_v3  ;;  %2182 = vmatprep.mubr.msk.f32.mxu1 %vm2542_vm0, %v2541_v1 }
 0x2f7   :  { %2176 = vmatprep.subr.mxu1 %v2541_v1 }
 0x2f8   :  { %2177 = vmatpush3.msra.mxu1 %v2634_v4 }
 0x2f9   :  { %2178 = vmatprep.subr.mxu1 %v2541_v1 }
 0x2fa   :  { %2179 = vmatpush3.msra.mxu1 %v2644_v6 }
 0x2fb   :  { %2180 = vmatprep.subr.mxu1 %v2541_v1 }
 0x2fc   :  { %2181 = vmatpush3.msra.mxu1 %v2650_v7 }
 0x2fd   :  { %2196 = vmatprep.subr.mxu1 %v2541_v1 }
 0x3b5   :  { %v350_v40 = vpop.f32.mrf.mxu1 }
 0x3b6   :  { %v354_v41 = vadd.f32 %v350_v40, %v115_v39 }
 0x3b7   :  { %v2162_v42 = vpop.f32.mrf.mxu1 }
 0x3b8   :  { %2273 = vtanh.f32 %v354_v41  ;;  %v2063_v44 = vmul.f32 -1.442695, %v354_v41 }
 0x3ba   :  { %2275 = vpow2.f32 %v2063_v44 }
 0x3c5   :  { %v2274_v43 = vpop.eup %2273 }
 0x3c6   :  { %364 = vrot.lane.b32.xlu0 %v2274_v43, %s2544_s13 }
 0x3c7   :  { %v2276_v45 = vpop.eup %2275 }
 0x3c8   :  { %v358_v46 = vadd.f32 1.0, %v2276_v45 }
 0x3ca   :  { %2277 = vrcp.f32 %v358_v46  ;;  %v2549_v46 = vmov 4  }
 0x3d7   :  { %v2278_v47 = vpop.eup %2277 }
 0x3d8   :  { %v362_v50 = vmul.f32 %v2278_v47, %v268_v29 }
 0x438   :  { %v365_v48 = vpop.permute.xlu0 %364 }
 0x439   :  { %v367_v49 = vmul.f32 %v2278_v47, %v365_v48 }
 0x43b   :  { %369 = vrot.lane.b32.xlu1 %v367_v49, %s2545_s3 }
 0x4ad   :  { %v370_v51 = vpop.permute.xlu1 %369 }
 0x4ae   :  { %v372_v52 = vadd.f32 %v370_v51, %v362_v50 }
 0x4b0   :  { %2279 = vtanh.f32 %v372_v52 }
 0x4bd   :  { %v2280_v53 = vpop.eup %2279 }
 0x4be   :  { %375 = vrot.lane.b32.xlu0 %v2280_v53, %s2544_s13 }
 0x4c2   :  { %117 = vperm.xlu0 %2259, %v2640_v5  }
 0x4c6   :  { %2260 = vset.pattern.permute.xlu0 %v2548_v23 }
 0x530   :  { %v376_v55 = vpop.permute.xlu0 %375 }
 0x531   :  { %v378_v56 = vmul.f32 %v2278_v47, %v376_v55 }
 0x533   :  { %v383_v57 = vrot.slane %v378_v56, %v2676_v10 }
 0x535   :  { %384 = vrot.lane.b32.xlu1 %v383_v57, %s2545_s3 }
 0x53d   :  { %v118_v59 = vpop.permute.xlu0 %117 }
 0x53e   :  { %v123_v60 = vrot.slane %v118_v59, %v2676_v10 }
 0x540   :  { %v124_v61 = vmul.f32 %v123_v60, %v2679_v13 }
 0x542   :  { %v125_v62 = vadd.f32 %v124_v61, %v2685_v15 }
 0x5a7   :  { %v385_v58 = vpop.permute.xlu1 %384 }
 0x5a8   :  { %2172 = vmatmul.mubr.msk.f32.vlgmr.msra.gmra.mxu0 %vm176_vm1, %v385_v58 }
 0x5a9   :  { %2186 = vmatpush3.msra.mxu0 %v2632_v3  ;;  %2193 = vmatprep.mubr.msk.f32.mxu0 %vm2542_vm0, %v2541_v1 }
 0x5aa   :  { %2187 = vmatprep.subr.mxu0 %v2541_v1 }
 0x5ab   :  { %2188 = vmatpush3.msra.mxu0 %v2634_v4 }
 0x5ac   :  { %2189 = vmatprep.subr.mxu0 %v2541_v1 }
 0x5ad   :  { %2190 = vmatpush3.msra.mxu0 %v2644_v6 }
 0x5ae   :  { %2191 = vmatprep.subr.mxu0 %v2541_v1 }
 0x5af   :  { %2192 = vmatpush3.msra.mxu0 %v2650_v7 }
 0x5b0   :  { %2207 = vmatprep.subr.mxu0 %v2541_v1 }
 0x668   :  { %v454_v63 = vpop.f32.mrf.mxu0 }
 0x669   :  { %v458_v0 = vadd.f32 %v454_v63, %v125_v62 }
 0x66a   :  { %v2173_v2 = vpop.f32.mrf.mxu0 }
 0x66b   :  { %2281 = vtanh.f32 %v458_v0  ;;  %v2065_v11 = vmul.f32 -1.442695, %v458_v0 }
 0x66d   :  { %2283 = vpow2.f32 %v2065_v11 }
 0x678   :  { %v2282_v8 = vpop.eup %2281 }
 0x679   :  { %468 = vrot.lane.b32.xlu1 %v2282_v8, %s2544_s13 }
 0x67a   :  { %v2284_v12 = vpop.eup %2283 }
 0x67b   :  { %v462_v14 = vadd.f32 1.0, %v2284_v12 }
 0x67d   :  { %2285 = vrcp.f32 %v462_v14  ;;  %v2550_v14 = vmov 5  }
 0x68a   :  { %v2286_v16 = vpop.eup %2285 }
 0x68b   :  { %v466_v19 = vmul.f32 %v2286_v16, %v372_v52 }
 0x6eb   :  { %v469_v17 = vpop.permute.xlu1 %468 }
 0x6ec   :  { %v471_v18 = vmul.f32 %v2286_v16, %v469_v17 }
 0x6ee   :  { %473 = vrot.lane.b32.xlu1 %v471_v18, %s2545_s3 }
 0x760   :  { %v474_v20 = vpop.permute.xlu1 %473 }
 0x761   :  { %v476_v21 = vadd.f32 %v474_v20, %v466_v19 }
 0x763   :  { %2287 = vtanh.f32 %v476_v21 }
 0x770   :  { %v2288_v22 = vpop.eup %2287 }
 0x771   :  { %479 = vrot.lane.b32.xlu0 %v2288_v22, %s2544_s13 }
 0x775   :  { %127 = vperm.xlu0 %2260, %v2640_v5  }
 0x779   :  { %2261 = vset.pattern.permute.xlu0 %v2549_v46 }
 0x7e3   :  { %v480_v24 = vpop.permute.xlu0 %479 }
 0x7e4   :  { %v482_v25 = vmul.f32 %v2286_v16, %v480_v24 }
 0x7e6   :  { %v487_v26 = vrot.slane %v482_v25, %v2676_v10 }
 0x7e8   :  { %488 = vrot.lane.b32.xlu1 %v487_v26, %s2545_s3 }
 0x7f0   :  { %v128_v28 = vpop.permute.xlu0 %127 }
 0x7f1   :  { %v133_v29 = vrot.slane %v128_v28, %v2676_v10 }
 0x7f3   :  { %v134_v30 = vmul.f32 %v133_v29, %v2679_v13 }
 0x7f5   :  { %v135_v31 = vadd.f32 %v134_v30, %v2685_v15 }
 0x85a   :  { %v489_v27 = vpop.permute.xlu1 %488 }
 0x85b   :  { %2183 = vmatmul.mubr.msk.f32.vlgmr.msra.gmra.mxu1 %vm176_vm1, %v489_v27 }
 0x85c   :  { %2197 = vmatpush3.msra.mxu1 %v2632_v3  ;;  %2204 = vmatprep.mubr.msk.f32.mxu1 %vm2542_vm0, %v2541_v1 }
 0x85d   :  { %2198 = vmatprep.subr.mxu1 %v2541_v1 }
 0x85e   :  { %2199 = vmatpush3.msra.mxu1 %v2634_v4 }
 0x85f   :  { %2200 = vmatprep.subr.mxu1 %v2541_v1 }
 0x860   :  { %2201 = vmatpush3.msra.mxu1 %v2644_v6 }
 0x861   :  { %2202 = vmatprep.subr.mxu1 %v2541_v1 }
 0x862   :  { %2203 = vmatpush3.msra.mxu1 %v2650_v7 }
 0x863   :  { %2218 = vmatprep.subr.mxu1 %v2541_v1 }
 0x91b   :  { %v558_v32 = vpop.f32.mrf.mxu1 }
 0x91c   :  { %v562_v33 = vadd.f32 %v558_v32, %v135_v31 }
 0x91d   :  { %v2184_v34 = vpop.f32.mrf.mxu1 }
 0x91e   :  { %2289 = vtanh.f32 %v562_v33  ;;  %v2067_v36 = vmul.f32 -1.442695, %v562_v33  ;;  %v2551_v34 = vmov 6  }
 0x920   :  { %2291 = vpow2.f32 %v2067_v36 }
 0x92b   :  { %v2290_v35 = vpop.eup %2289 }
 0x92c   :  { %572 = vrot.lane.b32.xlu1 %v2290_v35, %s2544_s13 }
 0x92d   :  { %v2292_v37 = vpop.eup %2291 }
 0x92e   :  { %v566_v38 = vadd.f32 1.0, %v2292_v37 }
 0x930   :  { %2293 = vrcp.f32 %v566_v38 }
 0x93d   :  { %v2294_v39 = vpop.eup %2293 }
 0x93e   :  { %v570_v42 = vmul.f32 %v2294_v39, %v476_v21 }
 0x99e   :  { %v573_v40 = vpop.permute.xlu1 %572 }
 0x99f   :  { %v575_v41 = vmul.f32 %v2294_v39, %v573_v40 }
 0x9a1   :  { %577 = vrot.lane.b32.xlu1 %v575_v41, %s2545_s3 }
 0xa13   :  { %v578_v43 = vpop.permute.xlu1 %577 }
 0xa14   :  { %v580_v44 = vadd.f32 %v578_v43, %v570_v42 }
 0xa16   :  { %2295 = vtanh.f32 %v580_v44 }
 0xa23   :  { %v2296_v45 = vpop.eup %2295 }
 0xa24   :  { %583 = vrot.lane.b32.xlu0 %v2296_v45, %s2544_s13 }
 0xa28   :  { %137 = vperm.xlu0 %2261, %v2640_v5  }
 0xa2c   :  { %2262 = vset.pattern.permute.xlu0 %v2550_v14 }
 0xa96   :  { %v584_v47 = vpop.permute.xlu0 %583 }
 0xa97   :  { %v586_v48 = vmul.f32 %v2294_v39, %v584_v47 }
 0xa99   :  { %v591_v49 = vrot.slane %v586_v48, %v2676_v10 }
 0xa9b   :  { %592 = vrot.lane.b32.xlu1 %v591_v49, %s2545_s3 }
 0xaa3   :  { %v138_v51 = vpop.permute.xlu0 %137 }
 0xaa4   :  { %v143_v52 = vrot.slane %v138_v51, %v2676_v10 }
 0xaa6   :  { %v144_v53 = vmul.f32 %v143_v52, %v2679_v13 }
 0xaa8   :  { %v145_v54 = vadd.f32 %v144_v53, %v2685_v15 }
 0xb0d   :  { %v593_v50 = vpop.permute.xlu1 %592 }
 0xb0e   :  { %2194 = vmatmul.mubr.msk.f32.vlgmr.msra.gmra.mxu0 %vm176_vm1, %v593_v50 }
 0xb0f   :  { %2208 = vmatpush3.msra.mxu0 %v2632_v3  ;;  %2215 = vmatprep.mubr.msk.f32.mxu0 %vm2542_vm0, %v2541_v1 }
 0xb10   :  { %2209 = vmatprep.subr.mxu0 %v2541_v1 }
 0xb11   :  { %2210 = vmatpush3.msra.mxu0 %v2634_v4 }
 0xb12   :  { %2211 = vmatprep.subr.mxu0 %v2541_v1 }
 0xb13   :  { %2212 = vmatpush3.msra.mxu0 %v2644_v6 }
 0xb14   :  { %2213 = vmatprep.subr.mxu0 %v2541_v1 }
 0xb15   :  { %2214 = vmatpush3.msra.mxu0 %v2650_v7 }
 0xbce   :  { %v662_v55 = vpop.f32.mrf.mxu0 }
 0xbcf   :  { %v666_v56 = vadd.f32 %v662_v55, %v145_v54 }
 0xbd0   :  { %v2195_v57 = vpop.f32.mrf.mxu0 }
 0xbd1   :  { %2297 = vtanh.f32 %v666_v56  ;;  %v2069_v59 = vmul.f32 -1.442695, %v666_v56  ;;  %v2552_v57 = vmov 7  }
 0xbd3   :  { %2299 = vpow2.f32 %v2069_v59 }
 0xbde   :  { %v2298_v58 = vpop.eup %2297 }
 0xbdf   :  { %676 = vrot.lane.b32.xlu1 %v2298_v58, %s2544_s13 }
 0xbe0   :  { %v2300_v60 = vpop.eup %2299 }
 0xbe1   :  { %v670_v61 = vadd.f32 1.0, %v2300_v60 }
 0xbe3   :  { %2301 = vrcp.f32 %v670_v61 }
 0xbf0   :  { %v2302_v62 = vpop.eup %2301 }
 0xbf1   :  { %v674_v2 = vmul.f32 %v2302_v62, %v580_v44 }
 0xc51   :  { %v677_v63 = vpop.permute.xlu1 %676 }
 0xc52   :  { %v679_v0 = vmul.f32 %v2302_v62, %v677_v63 }
 0xc54   :  { %681 = vrot.lane.b32.xlu1 %v679_v0, %s2545_s3 }
 0xcc6   :  { %v682_v8 = vpop.permute.xlu1 %681 }
 0xcc7   :  { %v684_v11 = vadd.f32 %v682_v8, %v674_v2 }
 0xcc9   :  { %2303 = vtanh.f32 %v684_v11 }
 0xcd6   :  { %v2304_v12 = vpop.eup %2303 }
 0xcd7   :  { %687 = vrot.lane.b32.xlu0 %v2304_v12, %s2544_s13 }
 0xcdb   :  { %147 = vperm.xlu0 %2262, %v2640_v5  }
 0xcdf   :  { %2263 = vset.pattern.permute.xlu0 %v2551_v34  ;;  %v1022_v34 = vld [vmem:[#allocation8 + $0x8] sm:$0xff] }
 0xd49   :  { %v688_v16 = vpop.permute.xlu0 %687 }
 0xd4a   :  { %v690_v17 = vmul.f32 %v2302_v62, %v688_v16 }
 0xd4c   :  { %v695_v18 = vrot.slane %v690_v17, %v2676_v10 }
 0xd4e   :  { %696 = vrot.lane.b32.xlu1 %v695_v18, %s2545_s3 }
 0xd56   :  { %v148_v20 = vpop.permute.xlu0 %147 }
 0xd57   :  { %v153_v21 = vrot.slane %v148_v20, %v2676_v10 }
 0xdc0   :  { %v697_v19 = vpop.permute.xlu1 %696 }
 0xdc1   :  { %2205 = vmatmul.mubr.msk.f32.vlgmr.msra.gmra.mxu1 %vm176_vm1, %v697_v19 }
 0xdc2   :  { %2219 = vmatpush3.msra.mxu1 %v2632_v3  ;;  %2226 = vmatprep.mubr.msk.f32.mxu1 %vm2542_vm0, %v2541_v1  ;;  %v154_v3 = vmul.f32 %v153_v21, %v2679_v13 }
 0xdc3   :  { %2220 = vmatprep.subr.mxu1 %v2541_v1 }
 0xdc4   :  { %2221 = vmatpush3.msra.mxu1 %v2634_v4  ;;  %v155_v22 = vadd.f32 %v154_v3, %v2685_v15  ;;  %v2814_v3 = vld [vmem:[#allocation9 + $0x78] sm:$0xff] }
 0xdc5   :  { %2222 = vmatprep.subr.mxu1 %v2541_v1 }
 0xdc6   :  { %2223 = vmatpush3.msra.mxu1 %v2644_v6 }
 0xdc7   :  { %2224 = vmatprep.subr.mxu1 %v2541_v1 }
 0xdc8   :  { %2225 = vmatpush3.msra.mxu1 %v2650_v7 }
 0xdc9   :  { %1140 = vmatprep.subr.mxu1 %v2814_v3 }
 0xe81   :  { %v766_v23 = vpop.f32.mrf.mxu1 }
 0xe82   :  { %v770_v24 = vadd.f32 %v766_v23, %v155_v22  ;;  %v2816_v22 = vld [vmem:[#allocation9 + $0x70] sm:$0xff]  ;;  %v2818_v23 = vld [vmem:[#allocation9 + $0x68] sm:$0xff] }
 0xe83   :  { %v2206_v25 = vpop.f32.mrf.mxu1 }
 0xe84   :  { %2305 = vtanh.f32 %v770_v24  ;;  %v2071_v26 = vmul.f32 -1.442695, %v770_v24  ;;  %v2821_v24 = vld [vmem:[#allocation9 + $0x60] sm:$0xff]  ;;  %v2824_v25 = vld [vmem:[#allocation9 + $0x58] sm:$0xff] }
 0xe86   :  { %2307 = vpow2.f32 %v2071_v26  ;;  %v2827_v26 = vld [vmem:[#allocation9 + $0x50] sm:$0xff] }
 0xe91   :  { %v2306_v4 = vpop.eup %2305 }
 0xe92   :  { %780 = vrot.lane.b32.xlu1 %v2306_v4, %s2544_s13  ;;  %v1028_v4 = vld [vmem:[#allocation8 + $0x38] sm:$0xff] }
 0xe93   :  { %v2308_v6 = vpop.eup %2307  ;;  %1074 = vmatprep.subr.mxu0 %v1028_v4 }
 0xe94   :  { %v774_v27 = vadd.f32 1.0, %v2308_v6  ;;  %v1027_v6 = vld [vmem:[#allocation8 + $0x30] sm:$0xff] }
 0xe96   :  { %2309 = vrcp.f32 %v774_v27  ;;  %v2830_v27 = vld [vmem:[#allocation9 + $0x48] sm:$0xff] }
 0xea3   :  { %v2310_v7 = vpop.eup %2309 }
 0xea4   :  { %v778_v30 = vmul.f32 %v2310_v7, %v684_v11 }
 0xf04   :  { %v781_v28 = vpop.permute.xlu1 %780 }
 0xf05   :  { %v783_v29 = vmul.f32 %v2310_v7, %v781_v28  ;;  %v1025_v28 = vld [vmem:[#allocation8 + $0x20] sm:$0xff] }
 0xf07   :  { %785 = vrot.lane.b32.xlu1 %v783_v29, %s2545_s3  ;;  %v2833_v29 = vld [vmem:[#allocation9 + $0x40] sm:$0xff] }
 0xf79   :  { %v786_v31 = vpop.permute.xlu1 %785 }
 0xf7a   :  { %v788_v32 = vadd.f32 %v786_v31, %v778_v30  ;;  %v1024_v30 = vld [vmem:[#allocation8 + $0x18] sm:$0xff] }
 0xf7b   :  { %v2836_v31 = vld [vmem:[#allocation9 + $0x38] sm:$0xff] }
 0xf7c   :  { %2311 = vtanh.f32 %v788_v32 }
 0xf89   :  { %v2312_v33 = vpop.eup %2311 }
 0xf8a   :  { %791 = vrot.lane.b32.xlu0 %v2312_v33, %s2544_s13  ;;  %v2839_v33 = vld [vmem:[#allocation9 + $0x30] sm:$0xff] }
 0xf8e   :  { %157 = vperm.xlu0 %2263, %v2640_v5  }
 0xf92   :  { %2264 = vset.pattern.permute.xlu0 %v2552_v57 }
 0xffc   :  { %v792_v35 = vpop.permute.xlu0 %791 }
 0xffd   :  { %v794_v36 = vmul.f32 %v2310_v7, %v792_v35  ;;  %v1026_v7 = vld [vmem:[#allocation8 + $0x28] sm:$0xff] }
 0xfff   :  { %v799_v37 = vrot.slane %v794_v36, %v2676_v10  ;;  %v2842_v36 = vld [vmem:[#allocation9 + $0x28] sm:$0xff] }
0x1001   :  { %800 = vrot.lane.b32.xlu1 %v799_v37, %s2545_s3  ;;  %v1021_v37 = vld [vmem:[#allocation8] sm:$0xff] }
0x1009   :  { %v158_v39 = vpop.permute.xlu0 %157 }
0x100a   :  { %v163_v40 = vrot.slane %v158_v39, %v2676_v10  ;;  %v2849_v39 = vld [vmem:[#allocation9 + $0x18] sm:$0xff] }
0x100c   :  { %v164_v41 = vmul.f32 %v163_v40, %v2679_v13  ;;  %v2852_v40 = vld [vmem:[#allocation9 + $0x10] sm:$0xff] }
0x100e   :  { %v165_v42 = vadd.f32 %v164_v41, %v2685_v15  ;;  %v2855_v41 = vld [vmem:[#allocation9 + $0x8] sm:$0xff] }
0x1073   :  { %v801_v38 = vpop.permute.xlu1 %800 }
0x1074   :  { %2216 = vmatmul.mubr.msk.f32.vlgmr.msra.gmra.mxu0 %vm176_vm1, %v801_v38  ;;  %v2846_v38 = vld [vmem:[#allocation9 + $0x20] sm:$0xff] }
0x1075   :  { %1114 = vmatprep.mubr.f32.mxu0 %v2541_v1  ;;  %1075 = vmatpush1.msra.mxu0 %v1027_v6 }
0x1076   :  { %1076 = vmatprep.subr.mxu0 %v1026_v7 }
0x1077   :  { %1077 = vmatpush1.msra.mxu0 %v1025_v28 }
0x1078   :  { %1078 = vmatprep.subr.mxu0 %v1024_v30 }
0x1134   :  { %v870_v43 = vpop.f32.mrf.mxu0 }
0x1135   :  { %v874_v44 = vadd.f32 %v870_v43, %v165_v42  ;;  %v2859_v42 = vld [vmem:[#allocation9] sm:$0xff] }
0x1136   :  { %v2217_v45 = vpop.f32.mrf.mxu0 }
0x1137   :  { %2313 = vtanh.f32 %v874_v44  ;;  %v2073_v47 = vmul.f32 -1.442695, %v874_v44 }
0x1139   :  { %2315 = vpow2.f32 %v2073_v47  ;;  %v1029_v47 = vld [vmem:[%s3087_s6] sm:$0x3] }
0x1144   :  { %v2314_v46 = vpop.eup %2313 }
0x1145   :  { %884 = vrot.lane.b32.xlu1 %v2314_v46, %s2544_s13 }
0x1146   :  { %v2316_v48 = vpop.eup %2315 }
0x1147   :  { %v878_v49 = vadd.f32 1.0, %v2316_v48  ;;  %v1041_v48 = vrot.slane %v1029_v47, %v2676_v10 }
0x1149   :  { %2317 = vrcp.f32 %v878_v49 }
0x1156   :  { %v2318_v50 = vpop.eup %2317 }
0x1157   :  { %v882_v53 = vmul.f32 %v2318_v50, %v788_v32  ;;  %v1023_v32 = vld [vmem:[#allocation8 + $0x10] sm:$0xff] }
0x1158   :  { %1079 = vmatpush1.msra.mxu0 %v1023_v32 }
0x1159   :  { %1080 = vmatprep.subr.mxu0 %v1022_v34 }
0x115a   :  { %1081 = vmatpush1.msra.mxu0 %v1021_v37 }
0x115b   :  { %1260 = vmatprep.subr.mxu0 %v2814_v3 }
0x11b7   :  { %v885_v51 = vpop.permute.xlu1 %884 }
0x11b8   :  { %v887_v52 = vmul.f32 %v2318_v50, %v885_v51 }
0x11ba   :  { %889 = vrot.lane.b32.xlu1 %v887_v52, %s2545_s3 }
0x122c   :  { %v890_v54 = vpop.permute.xlu1 %889 }
0x122d   :  { %v892_v55 = vadd.f32 %v890_v54, %v882_v53  ;;  %v1044_v54 = vsub.s32 1, %v2673_v9 }
0x122f   :  { %2319 = vtanh.f32 %v892_v55 }
0x123c   :  { %v2320_v56 = vpop.eup %2319 }
0x123d   :  { %895 = vrot.lane.b32.xlu0 %v2320_v56, %s2544_s13 }
0x1241   :  { %167 = vperm.xlu0 %2264, %v2640_v5  }
0x12af   :  { %v896_v58 = vpop.permute.xlu0 %895 }
0x12b0   :  { %v898_v59 = vmul.f32 %v2318_v50, %v896_v58 }
0x12b2   :  { %v903_v60 = vrot.slane %v898_v59, %v2676_v10 }
0x12b4   :  { %904 = vrot.lane.b32.xlu1 %v903_v60, %s2545_s3 }
0x12bc   :  { %v168_v62 = vpop.permute.xlu0 %167 }
0x12bd   :  { %v173_v63 = vrot.slane %v168_v62, %v2676_v10 }
0x12bf   :  { %v174_v0 = vmul.f32 %v173_v63, %v2679_v13 }
0x12c1   :  { %v175_v2 = vadd.f32 %v174_v0, %v2685_v15 }
0x1326   :  { %v905_v61 = vpop.permute.xlu1 %904 }
0x1327   :  { %2227 = vmatmul.mubr.msk.f32.vlgmr.msra.gmra.mxu1 %vm176_vm1, %v905_v61 }
0x1328   :  { %1188 = vmatprep.mubr.f32.mxu1 %v2541_v1  ;;  %1141 = vmatpush1.msra.mxu1 %v2816_v22 }
0x1329   :  { %1142 = vmatprep.subr.mxu1 %v2818_v23 }
0x132a   :  { %1143 = vmatpush1.msra.mxu1 %v2821_v24 }
0x132b   :  { %1144 = vmatprep.subr.mxu1 %v2824_v25 }
0x132c   :  { %1145 = vmatpush1.msra.mxu1 %v2827_v26 }
0x132d   :  { %1146 = vmatprep.subr.mxu1 %v2830_v27 }
0x132e   :  { %1147 = vmatpush1.msra.mxu1 %v2833_v29 }
0x132f   :  { %1148 = vmatprep.subr.mxu1 %v2836_v31 }
0x1330   :  { %1149 = vmatpush1.msra.mxu1 %v2839_v33 }
0x1331   :  { %1150 = vmatprep.subr.mxu1 %v2842_v36 }
0x1332   :  { %1151 = vmatpush1.msra.mxu1 %v2846_v38 }
0x1333   :  { %1152 = vmatprep.subr.mxu1 %v2849_v39 }
0x1334   :  { %1153 = vmatpush1.msra.mxu1 %v2852_v40 }
0x1335   :  { %1154 = vmatprep.subr.mxu1 %v2855_v41 }
0x1336   :  { %1155 = vmatpush1.msra.mxu1 %v2859_v42 }
0x1337   :  { %1189 = vmatmul.mubr.f32.vlgmr.msra.gmra.mxu1 %v2541_v1  ;;  %1375 = vmatprep.subr.mxu1 %v2814_v3 }
0x1338   :  { %1376 = vmatpush1.msra.mxu1 %v2816_v22  ;;  %1423 = vmatprep.mubr.f32.mxu1 %v2541_v1 }
0x1339   :  { %1377 = vmatprep.subr.mxu1 %v2818_v23 }
0x133a   :  { %1378 = vmatpush1.msra.mxu1 %v2821_v24 }
0x133b   :  { %1379 = vmatprep.subr.mxu1 %v2824_v25 }
0x133c   :  { %1380 = vmatpush1.msra.mxu1 %v2827_v26 }
0x133d   :  { %1381 = vmatprep.subr.mxu1 %v2830_v27 }
0x133e   :  { %1382 = vmatpush1.msra.mxu1 %v2833_v29 }
0x133f   :  { %1383 = vmatprep.subr.mxu1 %v2836_v31 }
0x1340   :  { %1384 = vmatpush1.msra.mxu1 %v2839_v33 }
0x1341   :  { %1385 = vmatprep.subr.mxu1 %v2842_v36 }
0x1342   :  { %1386 = vmatpush1.msra.mxu1 %v2846_v38 }
0x1343   :  { %1387 = vmatprep.subr.mxu1 %v2849_v39 }
0x1344   :  { %1388 = vmatpush1.msra.mxu1 %v2852_v40 }
0x1345   :  { %1389 = vmatprep.subr.mxu1 %v2855_v41 }
0x1346   :  { %1390 = vmatpush1.msra.mxu1 %v2859_v42 }
0x1347   :  { %1605 = vmatprep.subr.mxu1 %v2814_v3 }
0x13e7   :  { %v974_v8 = vpop.f32.mrf.mxu1 }
0x13e8   :  { %v978_v5 = vadd.f32 %v974_v8, %v175_v2 }
0x13e9   :  { %v2228_v11 = vpop.f32.mrf.mxu1 }
0x13ea   :  { %2321 = vtanh.f32 %v978_v5  ;;  %v2075_v14 = vmul.f32 -1.442695, %v978_v5 }
0x13ec   :  { %2323 = vpow2.f32 %v2075_v14 }
0x13f7   :  { %v2322_v12 = vpop.eup %2321  ;;  %v1190_v51 = vpop.f32.mrf.mxu1 }
0x13f8   :  { %988 = vrot.lane.b32.xlu1 %v2322_v12, %s2544_s13 }
0x13f9   :  { %v2324_v16 = vpop.eup %2323  ;;  %v1192_v58 = vpop.f32.mrf.mxu1 }
0x13fa   :  { %v982_v17 = vadd.f32 1.0, %v2324_v16 }
0x13fc   :  { %2325 = vrcp.f32 %v982_v17 }
0x1409   :  { %v2809_v18 = vpop.eup %2325 }
0x140a   :  { %v986_v13 = vmul.f32 %v2809_v18, %v892_v55  ;;  %v1045_v55 = vrot.slane %v1029_v47, %v1044_v54 }
0x146a   :  { %v989_v19 = vpop.permute.xlu1 %988 }
0x146b   :  { %v991_v20 = vmul.f32 %v2809_v18, %v989_v19 }
0x146d   :  { %993 = vrot.lane.b32.xlu1 %v991_v20, %s2545_s3 }
0x14df   :  { %v994_v15 = vpop.permute.xlu1 %993 }
0x14e0   :  { %v996_v21 = vadd.f32 %v994_v15, %v986_v13 }
0x14e2   :  { %2327 = vtanh.f32 %v996_v21 }
0x14ef   :  { %v2328_v35 = vpop.eup %2327 }
0x14f0   :  { %999 = vrot.lane.b32.xlu0 %v2328_v35, %s2544_s13 }
0x1562   :  { %v1000_v43 = vpop.permute.xlu0 %999 }
0x1563   :  { %v1002_v44 = vmul.f32 %v2809_v18, %v1000_v43 }
0x1565   :  { %v1034_v45 = vrot.slane %v1002_v44, %v2676_v10 }
0x1567   :  { %1035 = vrot.lane.b32.xlu1 %v1034_v45, %s2545_s3 }
0x15d9   :  { %v1036_v46 = vpop.permute.xlu1 %1035 }
0x15da   :  { %2076 = vmatmul.mubr.msk.f32.vlgmr.msra.gmra.mxu0 %vm176_vm1, %v1036_v46 }
0x15db   :  { %1261 = vmatpush1.msra.mxu0 %v2816_v22  ;;  %1308 = vmatprep.mubr.f32.mxu0 %v2541_v1 }
0x15dc   :  { %1262 = vmatprep.subr.mxu0 %v2818_v23 }
0x15dd   :  { %1263 = vmatpush1.msra.mxu0 %v2821_v24 }
0x15de   :  { %1264 = vmatprep.subr.mxu0 %v2824_v25 }
0x15df   :  { %1265 = vmatpush1.msra.mxu0 %v2827_v26 }
0x15e0   :  { %1266 = vmatprep.subr.mxu0 %v2830_v27 }
0x15e1   :  { %1267 = vmatpush1.msra.mxu0 %v2833_v29 }
0x15e2   :  { %1268 = vmatprep.subr.mxu0 %v2836_v31 }
0x15e3   :  { %1269 = vmatpush1.msra.mxu0 %v2839_v33 }
0x15e4   :  { %1270 = vmatprep.subr.mxu0 %v2842_v36 }
0x15e5   :  { %1271 = vmatpush1.msra.mxu0 %v2846_v38 }
0x15e6   :  { %1272 = vmatprep.subr.mxu0 %v2849_v39 }
0x15e7   :  { %1273 = vmatpush1.msra.mxu0 %v2852_v40 }
0x15e8   :  { %1274 = vmatprep.subr.mxu0 %v2855_v41 }
0x15e9   :  { %1275 = vmatpush1.msra.mxu0 %v2859_v42 }
0x15ea   :  { %1490 = vmatprep.subr.mxu0 %v2814_v3 }
0x169a   :  { %v1116_v49 = vpop.f32.mrf.mxu0 }
0x169b   :  { %v2908_v50 = vadd.f32 %v1116_v49, %v1041_v48 }
0x169c   :  { %v1118_v56 = vpop.f32.mrf.mxu0 }
0x169d   :  { %v1195_v52 = vadd.f32 %v1190_v51, %v2908_v50  ;;  %v2912_v57 = vadd.f32 %v1118_v56, %v1045_v55 }
0x169f   :  { %v2077_v53 = vmul.f32 -1.442695, %v1195_v52  ;;  %v1196_v59 = vadd.f32 %v1192_v58, %v2912_v57 }
0x16a1   :  { %2329 = vpow2.f32 %v2077_v53  ;;  %v2078_v0 = vmul.f32 -1.442695, %v1196_v59 }
0x16a2   :  { %2331 = vtanh.f32 %v1196_v59 }
0x16ae   :  { %v2330_v60 = vpop.eup %2329 }
0x16af   :  { %v1203_v61 = vadd.f32 1.0, %v2330_v60  ;;  %v2332_v10 = vpop.eup %2331 }
0x16b1   :  { %2333 = vrcp.f32 %v1203_v61 }
0x16b2   :  { %2335 = vpow2.f32 %v2078_v0 }
0x16be   :  { %v2334_v62 = vpop.eup %2333 }
0x16bf   :  { %v1211_v63 = vmul.f32 %v2334_v62, %v2332_v10  ;;  %v2336_v9 = vpop.eup %2335  ;;  %v1210_v8 = vmul.f32 0.0, %v2334_v62 }
0x16c0   :  { %v1204_v2 = vadd.f32 1.0, %v2336_v9 }
0x16c1   :  { %1213 = vrot.lane.b32.xlu0 %v1211_v63, %s2544_s13 }
0x16c2   :  { %2337 = vrcp.f32 %v1204_v2 }
0x16cf   :  { %v2338_v12 = vpop.eup %2337 }
0x1733   :  { %v1214_v5 = vpop.permute.xlu0 %1213 }
0x1734   :  { %v1216_v11 = vadd.f32 %v1214_v5, %v1210_v8 }
0x1736   :  { %2339 = vtanh.f32 %v1216_v11 }
0x1743   :  { %v2340_v14 = vpop.eup %2339 }
0x1744   :  { %v2916_v16 = vmul.f32 %v2340_v14, %v2338_v12 }
0x1746   :  { %1240 = vrot.lane.b32.xlu1 %v2916_v16, %s2544_s13 }
0x17b8   :  { %v1241_v17 = vpop.permute.xlu1 %1240 }
0x17b9   :  { %2080 = vmatmul.mubr.msk.f32.vlgmr.msra.gmra.mxu0 %vm1121_vm2, %v1241_v17 }
0x17ba   :  { %1491 = vmatpush1.msra.mxu0 %v2816_v22  ;;  %1538 = vmatprep.mubr.f32.mxu0 %v2541_v1 }
0x17bb   :  { %1492 = vmatprep.subr.mxu0 %v2818_v23 }
0x17bc   :  { %1493 = vmatpush1.msra.mxu0 %v2821_v24 }
0x17bd   :  { %1494 = vmatprep.subr.mxu0 %v2824_v25 }
0x17be   :  { %1495 = vmatpush1.msra.mxu0 %v2827_v26 }
0x17bf   :  { %1496 = vmatprep.subr.mxu0 %v2830_v27 }
0x17c0   :  { %1497 = vmatpush1.msra.mxu0 %v2833_v29 }
0x17c1   :  { %1498 = vmatprep.subr.mxu0 %v2836_v31 }
0x17c2   :  { %1499 = vmatpush1.msra.mxu0 %v2839_v33 }
0x17c3   :  { %1500 = vmatprep.subr.mxu0 %v2842_v36 }
0x17c4   :  { %1501 = vmatpush1.msra.mxu0 %v2846_v38 }
0x17c5   :  { %1502 = vmatprep.subr.mxu0 %v2849_v39 }
0x17c6   :  { %1503 = vmatpush1.msra.mxu0 %v2852_v40 }
0x17c7   :  { %1504 = vmatprep.subr.mxu0 %v2855_v41 }
0x17c8   :  { %1505 = vmatpush1.msra.mxu0 %v2859_v42 }
0x17c9   :  { %1720 = vmatprep.subr.mxu0 %v2814_v3 }
0x1879   :  { %v1310_v18 = vpop.f32.mrf.mxu0 }
0x187a   :  { %v1315_v19 = vadd.f32 %v1310_v18, %v2908_v50 }
0x187b   :  { %v1312_v13 = vpop.f32.mrf.mxu0 }
0x187c   :  { %v2081_v20 = vmul.f32 -1.442695, %v1315_v19  ;;  %v1316_v15 = vadd.f32 %v1312_v13, %v2912_v57 }
0x187e   :  { %2341 = vpow2.f32 %v2081_v20  ;;  %v2082_v30 = vmul.f32 -1.442695, %v1316_v15 }
0x187f   :  { %2343 = vtanh.f32 %v1316_v15 }
0x188b   :  { %v2342_v21 = vpop.eup %2341 }
0x188c   :  { %v1323_v4 = vadd.f32 1.0, %v2342_v21  ;;  %v2344_v6 = vpop.eup %2343 }
0x188e   :  { %2345 = vrcp.f32 %v1323_v4 }
0x188f   :  { %2347 = vpow2.f32 %v2082_v30 }
0x189b   :  { %v2346_v7 = vpop.eup %2345 }
0x189c   :  { %v1331_v28 = vmul.f32 %v2346_v7, %v2344_v6  ;;  %v2348_v32 = vpop.eup %2347  ;;  %v1330_v35 = vmul.f32 %v2346_v7, %v1216_v11 }
0x189d   :  { %v1324_v34 = vadd.f32 1.0, %v2348_v32 }
0x189e   :  { %1333 = vrot.lane.b32.xlu0 %v1331_v28, %s2544_s13 }
0x189f   :  { %2349 = vrcp.f32 %v1324_v34 }
0x18ac   :  { %v2350_v44 = vpop.eup %2349 }
0x1910   :  { %v1334_v37 = vpop.permute.xlu0 %1333 }
0x1911   :  { %v1336_v43 = vadd.f32 %v1334_v37, %v1330_v35 }
0x1913   :  { %2351 = vtanh.f32 %v1336_v43 }
0x1920   :  { %v2352_v45 = vpop.eup %2351 }
0x1921   :  { %v2941_v46 = vmul.f32 %v2352_v45, %v2350_v44 }
0x1923   :  { %1355 = vrot.lane.b32.xlu1 %v2941_v46, %s2544_s13 }
0x1995   :  { %v1356_v47 = vpop.permute.xlu1 %1355 }
0x1996   :  { %2083 = vmatmul.mubr.msk.f32.vlgmr.msra.gmra.mxu1 %vm1121_vm2, %v1356_v47 }
0x1997   :  { %1606 = vmatpush1.msra.mxu1 %v2816_v22  ;;  %1653 = vmatprep.mubr.f32.mxu1 %v2541_v1 }
0x1998   :  { %1607 = vmatprep.subr.mxu1 %v2818_v23 }
0x1999   :  { %1608 = vmatpush1.msra.mxu1 %v2821_v24 }
0x199a   :  { %1609 = vmatprep.subr.mxu1 %v2824_v25 }
0x199b   :  { %1610 = vmatpush1.msra.mxu1 %v2827_v26 }
0x199c   :  { %1611 = vmatprep.subr.mxu1 %v2830_v27 }
0x199d   :  { %1612 = vmatpush1.msra.mxu1 %v2833_v29 }
0x199e   :  { %1613 = vmatprep.subr.mxu1 %v2836_v31 }
0x199f   :  { %1614 = vmatpush1.msra.mxu1 %v2839_v33 }
0x19a0   :  { %1615 = vmatprep.subr.mxu1 %v2842_v36 }
0x19a1   :  { %1616 = vmatpush1.msra.mxu1 %v2846_v38 }
0x19a2   :  { %1617 = vmatprep.subr.mxu1 %v2849_v39 }
0x19a3   :  { %1618 = vmatpush1.msra.mxu1 %v2852_v40 }
0x19a4   :  { %1619 = vmatprep.subr.mxu1 %v2855_v41 }
0x19a5   :  { %1620 = vmatpush1.msra.mxu1 %v2859_v42 }
0x19a6   :  { %1835 = vmatprep.subr.mxu1 %v2814_v3 }
0x1a56   :  { %v1425_v48 = vpop.f32.mrf.mxu1 }
0x1a57   :  { %v1430_v49 = vadd.f32 %v1425_v48, %v2908_v50 }
0x1a58   :  { %v1427_v52 = vpop.f32.mrf.mxu1 }
0x1a59   :  { %v2084_v51 = vmul.f32 -1.442695, %v1430_v49  ;;  %v1431_v53 = vadd.f32 %v1427_v52, %v2912_v57 }
0x1a5b   :  { %2353 = vpow2.f32 %v2084_v51  ;;  %v2085_v60 = vmul.f32 -1.442695, %v1431_v53 }
0x1a5c   :  { %2355 = vtanh.f32 %v1431_v53 }
0x1a68   :  { %v2354_v54 = vpop.eup %2353 }
0x1a69   :  { %v1438_v55 = vadd.f32 1.0, %v2354_v54  ;;  %v2356_v56 = vpop.eup %2355 }
0x1a6b   :  { %2357 = vrcp.f32 %v1438_v55 }
0x1a6c   :  { %2359 = vpow2.f32 %v2085_v60 }
0x1a78   :  { %v2358_v58 = vpop.eup %2357 }
0x1a79   :  { %v1446_v59 = vmul.f32 %v2358_v58, %v2356_v56  ;;  %v2360_v61 = vpop.eup %2359  ;;  %v1445_v62 = vmul.f32 %v2358_v58, %v1336_v43 }
0x1a7a   :  { %v1439_v10 = vadd.f32 1.0, %v2360_v61 }
0x1a7b   :  { %1448 = vrot.lane.b32.xlu0 %v1446_v59, %s2544_s13 }
0x1a7c   :  { %2361 = vrcp.f32 %v1439_v10 }
0x1a89   :  { %v2362_v9 = vpop.eup %2361 }
0x1aed   :  { %v1449_v63 = vpop.permute.xlu0 %1448 }
0x1aee   :  { %v1451_v0 = vadd.f32 %v1449_v63, %v1445_v62 }
0x1af0   :  { %2363 = vtanh.f32 %v1451_v0 }
0x1afd   :  { %v2364_v2 = vpop.eup %2363 }
0x1afe   :  { %v2966_v8 = vmul.f32 %v2364_v2, %v2362_v9 }
0x1b00   :  { %1470 = vrot.lane.b32.xlu1 %v2966_v8, %s2544_s13 }
0x1b72   :  { %v1471_v5 = vpop.permute.xlu1 %1470 }
0x1b73   :  { %2086 = vmatmul.mubr.msk.f32.vlgmr.msra.gmra.mxu0 %vm1121_vm2, %v1471_v5 }
0x1b74   :  { %1721 = vmatpush1.msra.mxu0 %v2816_v22  ;;  %1768 = vmatprep.mubr.f32.mxu0 %v2541_v1 }
0x1b75   :  { %1722 = vmatprep.subr.mxu0 %v2818_v23 }
0x1b76   :  { %1723 = vmatpush1.msra.mxu0 %v2821_v24 }
0x1b77   :  { %1724 = vmatprep.subr.mxu0 %v2824_v25 }
0x1b78   :  { %1725 = vmatpush1.msra.mxu0 %v2827_v26 }
0x1b79   :  { %1726 = vmatprep.subr.mxu0 %v2830_v27 }
0x1b7a   :  { %1727 = vmatpush1.msra.mxu0 %v2833_v29 }
0x1b7b   :  { %1728 = vmatprep.subr.mxu0 %v2836_v31 }
0x1b7c   :  { %1729 = vmatpush1.msra.mxu0 %v2839_v33 }
0x1b7d   :  { %1730 = vmatprep.subr.mxu0 %v2842_v36 }
0x1b7e   :  { %1731 = vmatpush1.msra.mxu0 %v2846_v38 }
0x1b7f   :  { %1732 = vmatprep.subr.mxu0 %v2849_v39 }
0x1b80   :  { %1733 = vmatpush1.msra.mxu0 %v2852_v40 }
0x1b81   :  { %1734 = vmatprep.subr.mxu0 %v2855_v41 }
0x1b82   :  { %1735 = vmatpush1.msra.mxu0 %v2859_v42 }
0x1b83   :  { %1950 = vmatprep.subr.mxu0 %v2814_v3 }
0x1c33   :  { %v1540_v11 = vpop.f32.mrf.mxu0 }
0x1c34   :  { %v1545_v12 = vadd.f32 %v1540_v11, %v2908_v50 }
0x1c35   :  { %v1542_v17 = vpop.f32.mrf.mxu0 }
0x1c36   :  { %v2087_v14 = vmul.f32 -1.442695, %v1545_v12  ;;  %v1546_v18 = vadd.f32 %v1542_v17, %v2912_v57 }
0x1c38   :  { %2365 = vpow2.f32 %v2087_v14  ;;  %v2088_v4 = vmul.f32 -1.442695, %v1546_v18 }
0x1c39   :  { %2367 = vtanh.f32 %v1546_v18 }
0x1c45   :  { %v2366_v19 = vpop.eup %2365 }
0x1c46   :  { %v1553_v20 = vadd.f32 1.0, %v2366_v19  ;;  %v2368_v13 = vpop.eup %2367 }
0x1c48   :  { %2369 = vrcp.f32 %v1553_v20 }
0x1c49   :  { %2371 = vpow2.f32 %v2088_v4 }
0x1c55   :  { %v2370_v15 = vpop.eup %2369 }
0x1c56   :  { %v1561_v21 = vmul.f32 %v2370_v15, %v2368_v13  ;;  %v2372_v3 = vpop.eup %2371  ;;  %v1560_v7 = vmul.f32 %v2370_v15, %v1451_v0 }
0x1c57   :  { %v1554_v6 = vadd.f32 1.0, %v2372_v3 }
0x1c58   :  { %1563 = vrot.lane.b32.xlu0 %v1561_v21, %s2544_s13 }
0x1c59   :  { %2373 = vrcp.f32 %v1554_v6 }
0x1c66   :  { %v2374_v32 = vpop.eup %2373 }
0x1cca   :  { %v1564_v28 = vpop.permute.xlu0 %1563 }
0x1ccb   :  { %v1566_v30 = vadd.f32 %v1564_v28, %v1560_v7 }
0x1ccd   :  { %2375 = vtanh.f32 %v1566_v30 }
0x1cda   :  { %v2376_v34 = vpop.eup %2375 }
0x1cdb   :  { %v2991_v35 = vmul.f32 %v2376_v34, %v2374_v32 }
0x1cdd   :  { %1585 = vrot.lane.b32.xlu1 %v2991_v35, %s2544_s13 }
0x1d4f   :  { %v1586_v37 = vpop.permute.xlu1 %1585 }
0x1d50   :  { %2089 = vmatmul.mubr.msk.f32.vlgmr.msra.gmra.mxu1 %vm1121_vm2, %v1586_v37 }
0x1d51   :  { %1836 = vmatpush1.msra.mxu1 %v2816_v22  ;;  %1883 = vmatprep.mubr.f32.mxu1 %v2541_v1 }
0x1d52   :  { %1837 = vmatprep.subr.mxu1 %v2818_v23 }
0x1d53   :  { %1838 = vmatpush1.msra.mxu1 %v2821_v24 }
0x1d54   :  { %1839 = vmatprep.subr.mxu1 %v2824_v25 }
0x1d55   :  { %1840 = vmatpush1.msra.mxu1 %v2827_v26 }
0x1d56   :  { %1841 = vmatprep.subr.mxu1 %v2830_v27 }
0x1d57   :  { %1842 = vmatpush1.msra.mxu1 %v2833_v29 }
0x1d58   :  { %1843 = vmatprep.subr.mxu1 %v2836_v31 }
0x1d59   :  { %1844 = vmatpush1.msra.mxu1 %v2839_v33 }
0x1d5a   :  { %1845 = vmatprep.subr.mxu1 %v2842_v36 }
0x1d5b   :  { %1846 = vmatpush1.msra.mxu1 %v2846_v38 }
0x1d5c   :  { %1847 = vmatprep.subr.mxu1 %v2849_v39 }
0x1d5d   :  { %1848 = vmatpush1.msra.mxu1 %v2852_v40 }
0x1d5e   :  { %1849 = vmatprep.subr.mxu1 %v2855_v41 }
0x1d5f   :  { %1850 = vmatpush1.msra.mxu1 %v2859_v42 }
0x1e10   :  { %v1655_v43 = vpop.f32.mrf.mxu1 }
0x1e11   :  { %v1660_v44 = vadd.f32 %v1655_v43, %v2908_v50 }
0x1e12   :  { %v1657_v47 = vpop.f32.mrf.mxu1 }
0x1e13   :  { %v2090_v45 = vmul.f32 -1.442695, %v1660_v44  ;;  %v1661_v48 = vadd.f32 %v1657_v47, %v2912_v57  ;;  %v2079_v44 = vld [vmem:[%s3088_s7] ss:$0 sm:$0xff]  ;;  %s2553_s7 = smov 1  }
0x1e15   :  { %2377 = vpow2.f32 %v2090_v45  ;;  %v2091_v55 = vmul.f32 -1.442695, %v1661_v48 }
0x1e16   :  { %2379 = vtanh.f32 %v1661_v48 }
0x1e22   :  { %v2378_v49 = vpop.eup %2377 }
0x1e23   :  { %v1668_v51 = vadd.f32 1.0, %v2378_v49  ;;  %v2380_v52 = vpop.eup %2379 }
0x1e25   :  { %2381 = vrcp.f32 %v1668_v51 }
0x1e26   :  { %2383 = vpow2.f32 %v2091_v55 }
0x1e32   :  { %v2382_v53 = vpop.eup %2381 }
0x1e33   :  { %v1676_v54 = vmul.f32 %v2382_v53, %v2380_v52  ;;  %v2384_v56 = vpop.eup %2383  ;;  %v1675_v59 = vmul.f32 %v2382_v53, %v1566_v30 }
0x1e34   :  { %v1669_v58 = vadd.f32 1.0, %v2384_v56 }
0x1e35   :  { %1678 = vrot.lane.b32.xlu0 %v1676_v54, %s2544_s13 }
0x1e36   :  { %2385 = vrcp.f32 %v1669_v58 }
0x1e43   :  { %v2386_v10 = vpop.eup %2385 }
0x1ea7   :  { %v1679_v60 = vpop.permute.xlu0 %1678 }
0x1ea8   :  { %v1681_v61 = vadd.f32 %v1679_v60, %v1675_v59 }
0x1eaa   :  { %2387 = vtanh.f32 %v1681_v61 }
0x1eb7   :  { %v2388_v62 = vpop.eup %2387 }
0x1eb8   :  { %v3015_v63 = vmul.f32 %v2388_v62, %v2386_v10 }
0x1eba   :  { %1700 = vrot.lane.b32.xlu1 %v3015_v63, %s2544_s13 }
0x1f2c   :  { %v1701_v0 = vpop.permute.xlu1 %1700 }
0x1f2d   :  { %2092 = vmatmul.mubr.msk.f32.vlgmr.msra.gmra.mxu0 %vm1121_vm2, %v1701_v0 }
0x1f2e   :  { %1951 = vmatpush1.msra.mxu0 %v2816_v22  ;;  %1998 = vmatprep.mubr.f32.mxu0 %v2541_v1 }
0x1f2f   :  { %1952 = vmatprep.subr.mxu0 %v2818_v23 }
0x1f30   :  { %1953 = vmatpush1.msra.mxu0 %v2821_v24 }
0x1f31   :  { %1954 = vmatprep.subr.mxu0 %v2824_v25 }
0x1f32   :  { %1955 = vmatpush1.msra.mxu0 %v2827_v26 }
0x1f33   :  { %1956 = vmatprep.subr.mxu0 %v2830_v27 }
0x1f34   :  { %1957 = vmatpush1.msra.mxu0 %v2833_v29 }
0x1f35   :  { %1958 = vmatprep.subr.mxu0 %v2836_v31 }
0x1f36   :  { %1959 = vmatpush1.msra.mxu0 %v2839_v33 }
0x1f37   :  { %1960 = vmatprep.subr.mxu0 %v2842_v36 }
0x1f38   :  { %1961 = vmatpush1.msra.mxu0 %v2846_v38 }
0x1f39   :  { %1962 = vmatprep.subr.mxu0 %v2849_v39 }
0x1f3a   :  { %1963 = vmatpush1.msra.mxu0 %v2852_v40 }
0x1f3b   :  { %1964 = vmatprep.subr.mxu0 %v2855_v41 }
0x1f3c   :  { %1965 = vmatpush1.msra.mxu0 %v2859_v42 }
0x1fed   :  { %v1770_v1 = vpop.f32.mrf.mxu0 }
0x1fee   :  { %v1775_v22 = vadd.f32 %v1770_v1, %v2908_v50 }
0x1fef   :  { %v1772_v24 = vpop.f32.mrf.mxu0 }
0x1ff0   :  { %v2093_v23 = vmul.f32 -1.442695, %v1775_v22  ;;  %v1776_v25 = vadd.f32 %v1772_v24, %v2912_v57 }
0x1ff2   :  { %2389 = vpow2.f32 %v2093_v23  ;;  %v2094_v36 = vmul.f32 -1.442695, %v1776_v25 }
0x1ff3   :  { %2391 = vtanh.f32 %v1776_v25 }
0x1fff   :  { %v2390_v26 = vpop.eup %2389 }
0x2000   :  { %v1783_v27 = vadd.f32 1.0, %v2390_v26  ;;  %v2392_v29 = vpop.eup %2391 }
0x2002   :  { %2393 = vrcp.f32 %v1783_v27 }
0x2003   :  { %2395 = vpow2.f32 %v2094_v36 }
0x200f   :  { %v2394_v31 = vpop.eup %2393 }
0x2010   :  { %v1791_v33 = vmul.f32 %v2394_v31, %v2392_v29  ;;  %v2396_v38 = vpop.eup %2395  ;;  %v1790_v40 = vmul.f32 %v2394_v31, %v1681_v61 }
0x2011   :  { %v1784_v39 = vadd.f32 1.0, %v2396_v38 }
0x2012   :  { %1793 = vrot.lane.b32.xlu0 %v1791_v33, %s2544_s13 }
0x2013   :  { %2397 = vrcp.f32 %v1784_v39 }
0x2020   :  { %v2398_v9 = vpop.eup %2397 }
0x2084   :  { %v1794_v41 = vpop.permute.xlu0 %1793 }
0x2085   :  { %v1796_v42 = vadd.f32 %v1794_v41, %v1790_v40 }
0x2087   :  { %2399 = vtanh.f32 %v1796_v42 }
0x2094   :  { %v2400_v2 = vpop.eup %2399 }
0x2095   :  { %v3039_v5 = vmul.f32 %v2400_v2, %v2398_v9 }
0x2097   :  { %1815 = vrot.lane.b32.xlu1 %v3039_v5, %s2544_s13 }
0x2109   :  { %v1816_v11 = vpop.permute.xlu1 %1815 }
0x210a   :  { %2095 = vmatmul.mubr.msk.f32.vlgmr.msra.gmra.mxu1 %vm1121_vm2, %v1816_v11 }
0x21ca   :  { %v1885_v12 = vpop.f32.mrf.mxu1 }
0x21cb   :  { %v1890_v14 = vadd.f32 %v1885_v12, %v2908_v50 }
0x21cc   :  { %v1887_v18 = vpop.f32.mrf.mxu1 }
0x21cd   :  { %v2096_v17 = vmul.f32 -1.442695, %v1890_v14  ;;  %v1891_v19 = vadd.f32 %v1887_v18, %v2912_v57 }
0x21cf   :  { %2401 = vpow2.f32 %v2096_v17  ;;  %v2097_v3 = vmul.f32 -1.442695, %v1891_v19 }
0x21d0   :  { %2403 = vtanh.f32 %v1891_v19 }
0x21dc   :  { %v2402_v20 = vpop.eup %2401 }
0x21dd   :  { %v1898_v13 = vadd.f32 1.0, %v2402_v20  ;;  %v2404_v15 = vpop.eup %2403 }
0x21df   :  { %2405 = vrcp.f32 %v1898_v13 }
0x21e0   :  { %2407 = vpow2.f32 %v2097_v3 }
0x21ec   :  { %v2406_v21 = vpop.eup %2405 }
0x21ed   :  { %v1906_v4 = vmul.f32 %v2406_v21, %v2404_v15  ;;  %v2408_v6 = vpop.eup %2407  ;;  %v1905_v28 = vmul.f32 %v2406_v21, %v1796_v42 }
0x21ee   :  { %v1899_v7 = vadd.f32 1.0, %v2408_v6 }
0x21ef   :  { %1908 = vrot.lane.b32.xlu0 %v1906_v4, %s2544_s13 }
0x21f0   :  { %2409 = vrcp.f32 %v1899_v7 }
0x21fd   :  { %v2410_v34 = vpop.eup %2409 }
0x2261   :  { %v1909_v30 = vpop.permute.xlu0 %1908 }
0x2262   :  { %v1911_v32 = vadd.f32 %v1909_v30, %v1905_v28 }
0x2264   :  { %2411 = vtanh.f32 %v1911_v32 }
0x2271   :  { %v2412_v37 = vpop.eup %2411 }
0x2272   :  { %v1913_v43 = vmul.f32 %v2412_v37, %v2410_v34 }
0x2274   :  { %1930 = vrot.lane.b32.xlu1 %v1913_v43, %s2544_s13 }
0x2278   :  { %1224 = vrot.lane.b32.xlu1 %v2079_v44, %s2544_s13 }
0x22e6   :  { %v1931_v45 = vpop.permute.xlu1 %1930 }
0x22e7   :  { %2098 = vmatmul.mubr.msk.f32.vlgmr.msra.gmra.mxu0 %vm1121_vm2, %v1931_v45 }
0x22ea   :  { %v1225_v59 = vpop.permute.xlu1 %1224 }
0x22eb   :  { %v1227_v60 = vmul.f32 %v1225_v59, %v2916_v16  ;;  %v1454_v27 = vmul.f32 %v2966_v8, %v1225_v59  ;;  %v1684_v29 = vmul.f32 %v3015_v63, %v1225_v59  ;;  %v1799_v31 = vmul.f32 %v3039_v5, %v1225_v59  ;;  %v1020_v8 = vld [vmem:[#allocation2] sm:$0x1] }
0x22ec   :  { %v1569_v33 = vmul.f32 %v2991_v35, %v1225_v59  ;;  %v1914_v38 = vmul.f32 %v1913_v43, %v1225_v59 }
0x23a7   :  { %v2000_v47 = vpop.f32.mrf.mxu0 }
0x23a8   :  { %v2005_v48 = vadd.f32 %v2000_v47, %v2908_v50  ;;  %v1339_v50 = vmul.f32 %v2941_v46, %v1225_v59 }
0x23a9   :  { %v2002_v51 = vpop.f32.mrf.mxu0 }
0x23aa   :  { %v2099_v49 = vmul.f32 -1.442695, %v2005_v48  ;;  %v2006_v52 = vadd.f32 %v2002_v51, %v2912_v57 }
0x23ac   :  { %2413 = vpow2.f32 %v2099_v49  ;;  %v2100_v61 = vmul.f32 -1.442695, %v2006_v52 }
0x23ad   :  { %2415 = vtanh.f32 %v2006_v52 }
0x23b9   :  { %v2414_v53 = vpop.eup %2413 }
0x23ba   :  { %v2013_v54 = vadd.f32 1.0, %v2414_v53  ;;  %v2416_v55 = vpop.eup %2415 }
0x23bc   :  { %2417 = vrcp.f32 %v2013_v54 }
0x23bd   :  { %2419 = vpow2.f32 %v2100_v61 }
0x23c9   :  { %v2418_v56 = vpop.eup %2417 }
0x23ca   :  { %v2021_v58 = vmul.f32 %v2418_v56, %v2416_v55  ;;  %v2420_v57 = vpop.eup %2419  ;;  %v2020_v62 = vmul.f32 %v2418_v56, %v1911_v32 }
0x23cb   :  { %v2014_v10 = vadd.f32 1.0, %v2420_v57 }
0x23cc   :  { %2023 = vrot.lane.b32.xlu0 %v2021_v58, %s2544_s13 }
0x23cd   :  { %2421 = vrcp.f32 %v2014_v10 }
0x23d0   :  { %1229 = vrot.lane.b32.xlu0 %v1227_v60, %s2544_s13 }
0x23d4   :  { %1341 = vrot.lane.b32.xlu0 %v1339_v50, %s2544_s13 }
0x23da   :  { %v2422_v46 = vpop.eup %2421 }
0x243e   :  { %v2024_v0 = vpop.permute.xlu0 %2023 }
0x243f   :  { %v2026_v1 = vadd.f32 %v2024_v0, %v2020_v62 }
0x2441   :  { %2423 = vtanh.f32 %v2026_v1 }
0x2442   :  { %v1230_v22 = vpop.permute.xlu0 %1229 }
0x2443   :  { %v1233_v23 = vsel %vm1232_vm3, %v1230_v22, 0.0 }
0x2444   :  { %1234 = vadd.xlane.f32.xlu1 %v1233_v23 }
0x2446   :  { %v1342_v16 = vpop.permute.xlu0 %1341 }
0x2447   :  { %v1344_v24 = vsel %vm1232_vm3, %v1342_v16, 0.0 }
0x2448   :  { %1345 = vadd.xlane.f32.xlu0 %v1344_v24 }
0x244e   :  { %v2424_v25 = vpop.eup %2423 }
0x244f   :  { %v2028_v26 = vmul.f32 %v2424_v25, %v2422_v46 }
0x2451   :  { %v2029_v36 = vmul.f32 %v2028_v26, %v1225_v59 }
0x2455   :  { %1456 = vrot.lane.b32.xlu1 %v1454_v27, %s2544_s13 }
0x2459   :  { %1686 = vrot.lane.b32.xlu1 %v1684_v29, %s2544_s13 }
0x245d   :  { %1801 = vrot.lane.b32.xlu1 %v1799_v31, %s2544_s13 }
0x245e   :  { %1571 = vrot.lane.b32.xlu0 %v1569_v33, %s2544_s13 }
0x2461   :  { %2031 = vrot.lane.b32.xlu1 %v2029_v36, %s2544_s13 }
0x2462   :  { %1916 = vrot.lane.b32.xlu0 %v1914_v38, %s2544_s13 }
0x24cd   :  { %v1235_v39 = vpop.xlane.xlu1 %1234 }
0x24ce   :  { %v1236_v63 = vadd.f32 %v1235_v39, %v1020_v8 }
0x24d0   :  { %1238 = vst.msk [vmem:[#allocation11] sm:$0x1] %vm1237_vm4, %v1236_v63 }
0x24d1   :  { %v1457_v40 = vpop.permute.xlu1 %1456  ;;  %v1346_v41 = vpop.xlane.xlu0 %1345 }
0x24d2   :  { %v1347_v42 = vadd.f32 %v1346_v41, %v1020_v8  ;;  %v1459_v35 = vsel %vm1232_vm3, %v1457_v40, 0.0 }
0x24d3   :  { %1460 = vadd.xlane.f32.xlu1 %v1459_v35 }
0x24d4   :  { %1349 = vrot.lane.b32.xlu0 %v1347_v42, %s2553_s7 }
0x24d5   :  { %v1687_v9 = vpop.permute.xlu1 %1686  ;;  %v1572_v2 = vpop.permute.xlu0 %1571 }
0x24d6   :  { %v1689_v5 = vsel %vm1232_vm3, %v1687_v9, 0.0  ;;  %v1574_v13 = vsel %vm1232_vm3, %v1572_v2, 0.0 }
0x24d7   :  { %1690 = vadd.xlane.f32.xlu1 %v1689_v5 }
0x24d9   :  { %v1917_v11 = vpop.permute.xlu0 %1916  ;;  %v1802_v17 = vpop.permute.xlu1 %1801 }
0x24da   :  { %v1919_v12 = vsel %vm1232_vm3, %v1917_v11, 0.0  ;;  %v1804_v15 = vsel %vm1232_vm3, %v1802_v17, 0.0 }
0x24db   :  { %1920 = vadd.xlane.f32.xlu1 %v1919_v12 }
0x24dd   :  { %v2032_v18 = vpop.permute.xlu1 %2031 }
0x24de   :  { %v2034_v21 = vsel %vm1232_vm3, %v2032_v18, 0.0 }
0x2546   :  { %v1350_v14 = vpop.permute.xlu0 %1349 }
0x2547   :  { %1353 = vst.msk [vmem:[#allocation11] sm:$0x1] %vm1352_vm5, %v1350_v14 }
0x255c   :  { %v1461_v19 = vpop.xlane.xlu1 %1460 }
0x255d   :  { %v1462_v20 = vadd.f32 %v1461_v19, %v1020_v8 }
0x255f   :  { %1464 = vrot.lane.b32.xlu0 %v1462_v20, %s2554_s17 }
0x2560   :  { %v1691_v4 = vpop.xlane.xlu1 %1690 }
0x2561   :  { %v1692_v3 = vadd.f32 %v1691_v4, %v1020_v8 }
0x2564   :  { %v1921_v34 = vpop.xlane.xlu1 %1920 }
0x2565   :  { %v1922_v43 = vadd.f32 %v1921_v34, %v1020_v8 }
0x257e   :  { %1575 = vadd.xlane.f32.xlu0 %v1574_v13 }
0x2582   :  { %1805 = vadd.xlane.f32.xlu0 %v1804_v15 }
0x2586   :  { %2035 = vadd.xlane.f32.xlu0 %v2034_v21 }
0x259c   :  { %1694 = vrot.lane.b32.xlu0 %v1692_v3, %s2555_s8 }
0x25d1   :  { %v1465_v6 = vpop.permute.xlu0 %1464 }
0x25d2   :  { %1468 = vst.msk [vmem:[#allocation11] sm:$0x1] %vm1467_vm6, %v1465_v6 }
0x2607   :  { %v1576_v7 = vpop.xlane.xlu0 %1575 }
0x2608   :  { %v1577_v28 = vadd.f32 %v1576_v7, %v1020_v8 }
0x260a   :  { %1579 = vrot.lane.b32.xlu1 %v1577_v28, %s2556_s18 }
0x260b   :  { %v1806_v30 = vpop.xlane.xlu0 %1805 }
0x260c   :  { %v1807_v32 = vadd.f32 %v1806_v30, %v1020_v8 }
0x260e   :  { %1809 = vrot.lane.b32.xlu1 %v1807_v32, %s2557_s19 }
0x260f   :  { %v2036_v37 = vpop.xlane.xlu0 %2035 }
0x2610   :  { %v2037_v44 = vadd.f32 %v2036_v37, %v1020_v8 }
0x2612   :  { %1924 = vrot.lane.b32.xlu1 %v1922_v43, %s2558_s20  ;;  %2039 = vrot.lane.b32.xlu0 %v2037_v44, %s2559_s21 }
0x2613   :  { %v1695_v47 = vpop.permute.xlu0 %1694 }
0x267c   :  { %v1580_v45 = vpop.permute.xlu1 %1579 }
0x267d   :  { %1583 = vst.msk [vmem:[#allocation11] sm:$0x1] %vm1582_vm7, %v1580_v45 }
0x267e   :  { %1698 = vst.msk [vmem:[#allocation11] sm:$0x1] %vm1697_vm8, %v1695_v47 }
0x2680   :  { %v1810_v48 = vpop.permute.xlu1 %1809 }
0x2681   :  { %1813 = vst.msk [vmem:[#allocation11] sm:$0x1] %vm1812_vm9, %v1810_v48 }
0x2684   :  { %v1925_v49 = vpop.permute.xlu1 %1924  ;;  %v2040_v51 = vpop.permute.xlu0 %2039 }
0x2685   :  { %1928 = vst.msk [vmem:[#allocation11] sm:$0x1] %vm1927_vm10, %v1925_v49 }
0x2686   :  { %2043 = vst.msk [vmem:[#allocation11] sm:$0x1] %vm2042_vm11, %v2040_v51 }
0x2687   :  { %2516 = shalt.err (!%p2513_p10)
}
0x2688   :  { %2053 = dma.vmem_to_hbm [thread:$0]  %s2051_s23, 16, %s3090_s9, [#allocation5]  }
0x2689   :  { %2531 = dma.done.wait [#allocation5], 16  }
0x268a   :  { %2532 = vsyncadd [#allocation5], 4294967280 }
0x268b   :  { %2057 = vsyncpa [#allocation4], 1 }
0x268c   :  { %2058 = vsyncpa [#allocation7], 1 }
0x268d   :  { %2059 = vsyncpa [#allocation10], 1 }
0x268e   :  { %2060 = vsyncpa [#allocation5], 1 }

</bundles_post_ra>
